<compile_context>
chip_gen: v5e
topology: v5e:2x2
jax: 0.10.0
libtpu: 0.0.40
codegen_flags: <defaults>
</compile_context>

<pallas_src>
import numpy as np
import jax
import jax.numpy as jnp
from jax import lax
from jax.experimental import pallas as pl
from jax.experimental.pallas import tpu as pltpu

# ------------------------- small ViT configuration -------------------------
B = 2                      # batch
C = 3                      # input channels
IMG = 16                   # image height / width
PATCH = 8                  # patch size (kernel == stride)
N_PATCH = (IMG // PATCH) ** 2          # 4 patches
SEQ = N_PATCH + 1                      # +1 cls token -> 5
DIM = 32                   # embedding dim
HEADS = 4
HEAD_DIM = DIM // HEADS
MLP = 4 * DIM              # mlp hidden dim
DEPTH = 2                  # number of transformer blocks
N_CLASSES = 10             # replaced head: nn.Linear(in_features, n_classes)
EPS = 1e-6                 # timm ViT LayerNorm eps

N_TOK = B * SEQ            # flattened token-slab rows
HEAD_PAD = 128             # lane-dense padded head width

# Block-diagonal (per-sample) attention bias: 0 within a sample, -1e30 across samples.
_row_batch = np.arange(N_TOK) // SEQ
ATTN_BIAS = jnp.asarray(
    np.where(_row_batch[:, None] == _row_batch[None, :], 0.0, -1e30), dtype=jnp.float32)


# ------------------------------ kernel helpers ------------------------------
def _ln(v, g, b):
    mu = jnp.mean(v, axis=-1, keepdims=True)
    var = jnp.mean((v - mu) ** 2, axis=-1, keepdims=True)
    return (v - mu) * lax.rsqrt(var + EPS) * g + b


def _gelu(x):
    # TODO(synk): timm ViT uses exact erf-GELU; tanh approximation kept for Mosaic safety.
    c = jnp.float32(0.7978845608028654)  # sqrt(2/pi)
    return 0.5 * x * (1.0 + jnp.tanh(c * (x + 0.044715 * x * x * x)))


# --------------------------- fused forward kernel ---------------------------
def fused_vit_kernel(xp_ref, pw_ref, pb_ref, cls_ref, pos_ref, bias_ref, *rest):
    n_blk = 12 * DEPTH
    blk = rest[:n_blk]
    ng_ref, nb_ref, hw_ref, hb_ref = rest[n_blk:n_blk + 4]
    o_ref = rest[n_blk + 4]
    tok_ref, cat_ref = rest[n_blk + 5:]

    # 1) patch embedding: conv(kernel==stride==patch) expressed as im2col @ W.
    emb = (jnp.dot(xp_ref[...], pw_ref[...], preferred_element_type=jnp.float32)
           + pb_ref[...])                                          # [B*N_PATCH, DIM]

    # 2) assemble the [B*SEQ, DIM] token slab: cls token + positional embedding.
    cls_row = cls_ref[...] + pos_ref[0:1, :]                        # [1, DIM]
    pos_patch = pos_ref[1:SEQ, :]                                   # [N_PATCH, DIM]
    for b in range(B):                                              # static, B=2
        tok_ref[b * SEQ:b * SEQ + 1, :] = cls_row
        tok_ref[b * SEQ + 1:(b + 1) * SEQ, :] = (
            emb[b * N_PATCH:(b + 1) * N_PATCH, :] + pos_patch)
    x = tok_ref[...]                                                # [N_TOK, DIM]

    bias = bias_ref[...]                                            # [N_TOK, N_TOK]
    scale = jnp.float32(HEAD_DIM ** -0.5)

    # 3) transformer blocks (statically unrolled).
    for d in range(DEPTH):
        (ln1g, ln1b, qkvw, qkvb, projw, projb,
         ln2g, ln2b, fc1w, fc1b, fc2w, fc2b) = blk[12 * d:12 * (d + 1)]

        # ---- multi-head self-attention over the whole batch slab ----
        h = _ln(x, ln1g[...], ln1b[...])
        qkv = jnp.dot(h, qkvw[...], preferred_element_type=jnp.float32) + qkvb[...]
        q = qkv[:, 0:DIM] * scale
        k = qkv[:, DIM:2 * DIM]
        v = qkv[:, 2 * DIM:3 * DIM]
        for hh in range(HEADS):                                     # static head loop
            s0, s1 = hh * HEAD_DIM, (hh + 1) * HEAD_DIM
            # contract head_dim of both operands -> no explicit transpose of K.
            att = lax.dot_general(q[:, s0:s1], k[:, s0:s1],
                                  (((1,), (1,)), ((), ())),
                                  preferred_element_type=jnp.float32)  # [N_TOK, N_TOK]
            att = att + bias                                        # block-diagonal mask
            att = att - jnp.max(att, axis=-1, keepdims=True)
            p = jnp.exp(att)
            p = p * pl.reciprocal(jnp.sum(p, axis=-1, keepdims=True), approx=True)
            cat_ref[:, s0:s1] = jnp.dot(p, v[:, s0:s1],
                                        preferred_element_type=jnp.float32)
        # single output projection on the concatenated head outputs.
        x = x + (jnp.dot(cat_ref[...], projw[...], preferred_element_type=jnp.float32)
                 + projb[...])

        # ---- MLP ----
        h2 = _ln(x, ln2g[...], ln2b[...])
        h2 = jnp.dot(h2, fc1w[...], preferred_element_type=jnp.float32) + fc1b[...]
        h2 = _gelu(h2)
        x = x + (jnp.dot(h2, fc2w[...], preferred_element_type=jnp.float32) + fc2b[...])

    # 4) final LayerNorm + (lane-padded) linear head, computed for all rows (rows are
    #    independent; it is cheaper than gathering cls rows first), then select cls rows.
    hN = _ln(x, ng_ref[...], nb_ref[...])
    logits = (jnp.dot(hN, hw_ref[...], preferred_element_type=jnp.float32)
              + hb_ref[...])                                        # [N_TOK, HEAD_PAD]
    for b in range(B):
        o_ref[b:b + 1, :] = logits[b * SEQ:b * SEQ + 1, :]


# ------------------------------ plain-JAX glue ------------------------------
def extract_patches(x):
    # x: [B, C, H, W] -> [B*N_PATCH, C*P*P]; flatten order (C, ph, pw) matches a
    # conv weight [D, C, P, P] flattened to [C*P*P, D] (stride == kernel == patch).
    g = IMG // PATCH
    xb = x.reshape(B, C, g, PATCH, g, PATCH)
    xb = xb.transpose(0, 2, 4, 1, 3, 5)                   # [B, gh, gw, C, P, P]
    return xb.reshape(B * N_PATCH, C * PATCH * PATCH)


def init_params(key):
    keys = iter(jax.random.split(key, 64))

    def nrm(shape, scale=0.02):
        return (scale * jax.random.normal(next(keys), shape)).astype(jnp.float32)

    head_w = nrm((DIM, N_CLASSES))
    head_b = jnp.zeros((1, N_CLASSES), jnp.float32)
    p = {
        "patch_w": nrm((C * PATCH * PATCH, DIM)),
        "patch_b": jnp.zeros((1, DIM), jnp.float32),
        "cls": nrm((1, DIM)),
        "pos": nrm((SEQ, DIM)),
        "norm_g": jnp.ones((1, DIM), jnp.float32),
        "norm_b": jnp.zeros((1, DIM), jnp.float32),
        # zero-pad head to 128 output lanes (lane-dense stores); sliced back outside kernel.
        "head_w_pad": jnp.pad(head_w, ((0, 0), (0, HEAD_PAD - N_CLASSES))),
        "head_b_pad": jnp.pad(head_b, ((0, 0), (0, HEAD_PAD - N_CLASSES))),
    }
    blocks = []
    for _ in range(DEPTH):
        blocks.append((
            jnp.ones((1, DIM), jnp.float32), jnp.zeros((1, DIM), jnp.float32),   # ln1 g/b
            nrm((DIM, 3 * DIM)), jnp.zeros((1, 3 * DIM), jnp.float32),            # qkv w/b
            nrm((DIM, DIM)), jnp.zeros((1, DIM), jnp.float32),                    # proj w/b
            jnp.ones((1, DIM), jnp.float32), jnp.zeros((1, DIM), jnp.float32),   # ln2 g/b
            nrm((DIM, MLP)), jnp.zeros((1, MLP), jnp.float32),                    # fc1 w/b
            nrm((MLP, DIM)), jnp.zeros((1, DIM), jnp.float32),                    # fc2 w/b
        ))
    p["blocks"] = blocks
    return p


@jax.jit
def vit_forward(x, params):
    xp = extract_patches(x)                                         # [B*N_PATCH, C*P*P]

    flat = [xp, params["patch_w"], params["patch_b"], params["cls"], params["pos"], ATTN_BIAS]
    for blk in params["blocks"]:
        flat.extend(blk)
    flat.extend([params["norm_g"], params["norm_b"],
                 params["head_w_pad"], params["head_b_pad"]])

    # Rough cost hints so XLA can schedule around the custom call.
    flops = (2 * (B * N_PATCH) * (C * PATCH * PATCH) * DIM
             + DEPTH * (2 * N_TOK * DIM * 3 * DIM
                        + HEADS * 2 * 2 * N_TOK * N_TOK * HEAD_DIM
                        + 2 * N_TOK * DIM * DIM
                        + 2 * 2 * N_TOK * DIM * MLP)
             + 2 * N_TOK * DIM * HEAD_PAD)
    transcendentals = DEPTH * (HEADS * N_TOK * N_TOK + N_TOK * MLP)
    bytes_accessed = sum(int(np.prod(a.shape)) * 4 for a in flat) + B * HEAD_PAD * 4

    # Single fused call, no grid: all inputs/activations live in VMEM for the whole forward.
    # (A batch-parallel grid axis for v7x's 2 TCs is deliberately omitted at this toy size;
    #  the ~0.35 us/step pipeline cost would exceed the per-sample compute.)
    out_pad = pl.pallas_call(
        fused_vit_kernel,
        out_shape=jax.ShapeDtypeStruct((B, HEAD_PAD), jnp.float32),
        scratch_shapes=[pltpu.VMEM((N_TOK, DIM), jnp.float32),      # token slab
                        pltpu.VMEM((N_TOK, DIM), jnp.float32)],     # concatenated head outputs
        cost_estimate=pl.CostEstimate(flops=flops,
                                      transcendentals=transcendentals,
                                      bytes_accessed=bytes_accessed),
    )(*flat)
    return out_pad[:, :N_CLASSES]                                   # [B, N_CLASSES]


if __name__ == "__main__":
    key = jax.random.PRNGKey(0)
    k_x, k_p = jax.random.split(key)
    x = jax.random.normal(k_x, (B, C, IMG, IMG), dtype=jnp.float32)  # NCHW like PyTorch
    params = init_params(k_p)

    out = vit_forward(x, params)
    out = jax.block_until_ready(out)
    assert out.shape == (B, N_CLASSES) and out.dtype == jnp.float32
    print("KERNEL_OK")
</pallas_src>

<mosaic_0001>
module attributes {stable_mosaic.version = 11 : i64} {
  func.func @fused_vit_kernel(%arg0: memref<8x192xf32, #tpu.memory_space<vmem>>, %arg1: memref<192x32xf32, #tpu.memory_space<vmem>>, %arg2: memref<1x32xf32, #tpu.memory_space<vmem>>, %arg3: memref<1x32xf32, #tpu.memory_space<vmem>>, %arg4: memref<5x32xf32, #tpu.memory_space<vmem>>, %arg5: memref<10x10xf32, #tpu.memory_space<vmem>>, %arg6: memref<1x32xf32, #tpu.memory_space<vmem>>, %arg7: memref<1x32xf32, #tpu.memory_space<vmem>>, %arg8: memref<32x96xf32, #tpu.memory_space<vmem>>, %arg9: memref<1x96xf32, #tpu.memory_space<vmem>>, %arg10: memref<32x32xf32, #tpu.memory_space<vmem>>, %arg11: memref<1x32xf32, #tpu.memory_space<vmem>>, %arg12: memref<1x32xf32, #tpu.memory_space<vmem>>, %arg13: memref<1x32xf32, #tpu.memory_space<vmem>>, %arg14: memref<32x128xf32, #tpu.memory_space<vmem>>, %arg15: memref<1x128xf32, #tpu.memory_space<vmem>>, %arg16: memref<128x32xf32, #tpu.memory_space<vmem>>, %arg17: memref<1x32xf32, #tpu.memory_space<vmem>>, %arg18: memref<1x32xf32, #tpu.memory_space<vmem>>, %arg19: memref<1x32xf32, #tpu.memory_space<vmem>>, %arg20: memref<32x96xf32, #tpu.memory_space<vmem>>, %arg21: memref<1x96xf32, #tpu.memory_space<vmem>>, %arg22: memref<32x32xf32, #tpu.memory_space<vmem>>, %arg23: memref<1x32xf32, #tpu.memory_space<vmem>>, %arg24: memref<1x32xf32, #tpu.memory_space<vmem>>, %arg25: memref<1x32xf32, #tpu.memory_space<vmem>>, %arg26: memref<32x128xf32, #tpu.memory_space<vmem>>, %arg27: memref<1x128xf32, #tpu.memory_space<vmem>>, %arg28: memref<128x32xf32, #tpu.memory_space<vmem>>, %arg29: memref<1x32xf32, #tpu.memory_space<vmem>>, %arg30: memref<1x32xf32, #tpu.memory_space<vmem>>, %arg31: memref<1x32xf32, #tpu.memory_space<vmem>>, %arg32: memref<32x128xf32, #tpu.memory_space<vmem>>, %arg33: memref<1x128xf32, #tpu.memory_space<vmem>>, %arg34: memref<2x128xf32, #tpu.memory_space<vmem>>, %arg35: memref<10x32xf32, #tpu.memory_space<vmem>>, %arg36: memref<10x32xf32, #tpu.memory_space<vmem>>) attributes {dimension_semantics = [], scalar_prefetch = 0 : i64, scratch_operands = 2 : i64, tpu.core_type = #tpu.core_type<tc>} {
    %c0 = arith.constant 0 : index
    %c0_0 = arith.constant 0 : index
    %0 = vector.load %arg0[%c0, %c0_0] : memref<8x192xf32, #tpu.memory_space<vmem>>, vector<8x192xf32>
    %c0_1 = arith.constant 0 : index
    %c0_2 = arith.constant 0 : index
    %1 = vector.load %arg1[%c0_1, %c0_2] : memref<192x32xf32, #tpu.memory_space<vmem>>, vector<192x32xf32>
    %cst = arith.constant dense<0.000000e+00> : vector<8x32xf32>
    %2 = tpu.matmul %0, %1, %cst {dimension_numbers = #tpu.dot_dimension_numbers<[1], [0], [0], [1], [0, 0, 1, 1], [], []>} : vector<8x192xf32>, vector<192x32xf32>, vector<8x32xf32> -> vector<8x32xf32>
    %c0_3 = arith.constant 0 : index
    %c0_4 = arith.constant 0 : index
    %3 = vector.load %arg2[%c0_3, %c0_4] : memref<1x32xf32, #tpu.memory_space<vmem>>, vector<1x32xf32>
    %4 = vector.broadcast %3 : vector<1x32xf32> to vector<8x32xf32>
    %5 = arith.addf %2, %4 : vector<8x32xf32>
    %c0_5 = arith.constant 0 : index
    %c0_6 = arith.constant 0 : index
    %6 = vector.load %arg3[%c0_5, %c0_6] : memref<1x32xf32, #tpu.memory_space<vmem>>, vector<1x32xf32>
    %c0_7 = arith.constant 0 : index
    %c0_8 = arith.constant 0 : index
    %7 = vector.load %arg4[%c0_7, %c0_8] : memref<5x32xf32, #tpu.memory_space<vmem>>, vector<1x32xf32>
    %8 = arith.addf %6, %7 : vector<1x32xf32>
    %c1 = arith.constant 1 : index
    %c0_9 = arith.constant 0 : index
    %9 = vector.load %arg4[%c1, %c0_9] : memref<5x32xf32, #tpu.memory_space<vmem>>, vector<4x32xf32>
    %c0_10 = arith.constant 0 : index
    %c0_11 = arith.constant 0 : index
    %10 = vector.load %arg35[%c0_10, %c0_11] : memref<10x32xf32, #tpu.memory_space<vmem>>, vector<1x32xf32>
    tpu.vector_store %arg35[%c0_10, %c0_11], %8 {strides = array<i32>} : memref<10x32xf32, #tpu.memory_space<vmem>>, vector<1x32xf32>,
    %11 = vector.extract_strided_slice %5 {offsets = [0, 0], sizes = [4, 32], strides = [1, 1]} : vector<8x32xf32> to vector<4x32xf32>
    %12 = arith.addf %11, %9 : vector<4x32xf32>
    %c1_12 = arith.constant 1 : index
    %c0_13 = arith.constant 0 : index
    %13 = vector.load %arg35[%c1_12, %c0_13] : memref<10x32xf32, #tpu.memory_space<vmem>>, vector<4x32xf32>
    tpu.vector_store %arg35[%c1_12, %c0_13], %12 {strides = array<i32>} : memref<10x32xf32, #tpu.memory_space<vmem>>, vector<4x32xf32>,
    %c5 = arith.constant 5 : index
    %c0_14 = arith.constant 0 : index
    %14 = vector.load %arg35[%c5, %c0_14] : memref<10x32xf32, #tpu.memory_space<vmem>>, vector<1x32xf32>
    tpu.vector_store %arg35[%c5, %c0_14], %8 {strides = array<i32>} : memref<10x32xf32, #tpu.memory_space<vmem>>, vector<1x32xf32>,
    %15 = vector.extract_strided_slice %5 {offsets = [4, 0], sizes = [4, 32], strides = [1, 1]} : vector<8x32xf32> to vector<4x32xf32>
    %16 = arith.addf %15, %9 : vector<4x32xf32>
    %c6 = arith.constant 6 : index
    %c0_15 = arith.constant 0 : index
    %17 = vector.load %arg35[%c6, %c0_15] : memref<10x32xf32, #tpu.memory_space<vmem>>, vector<4x32xf32>
    tpu.vector_store %arg35[%c6, %c0_15], %16 {strides = array<i32>} : memref<10x32xf32, #tpu.memory_space<vmem>>, vector<4x32xf32>,
    %c0_16 = arith.constant 0 : index
    %c0_17 = arith.constant 0 : index
    %18 = vector.load %arg35[%c0_16, %c0_17] : memref<10x32xf32, #tpu.memory_space<vmem>>, vector<10x32xf32>
    %c0_18 = arith.constant 0 : index
    %c0_19 = arith.constant 0 : index
    %19 = vector.load %arg5[%c0_18, %c0_19] : memref<10x10xf32, #tpu.memory_space<vmem>>, vector<10x10xf32>
    %c0_20 = arith.constant 0 : index
    %c0_21 = arith.constant 0 : index
    %20 = vector.load %arg6[%c0_20, %c0_21] : memref<1x32xf32, #tpu.memory_space<vmem>>, vector<1x32xf32>
    %c0_22 = arith.constant 0 : index
    %c0_23 = arith.constant 0 : index
    %21 = vector.load %arg7[%c0_22, %c0_23] : memref<1x32xf32, #tpu.memory_space<vmem>>, vector<1x32xf32>
    %cst_24 = arith.constant dense<0.000000e+00> : vector<10xf32>
    %22 = vector.multi_reduction <add>, %18, %cst_24 [1] : vector<10x32xf32> to vector<10xf32>
    %23 = vector.shape_cast %22 : vector<10xf32> to vector<10x1xf32>
    %cst_25 = arith.constant 3.200000e+01 : f32
    %24 = vector.broadcast %cst_25 : f32 to vector<10x1xf32>
    %25 = arith.divf %23, %24 : vector<10x1xf32>
    %26 = vector.broadcast %25 : vector<10x1xf32> to vector<10x32xf32>
    %27 = arith.subf %18, %26 : vector<10x32xf32>
    %28 = arith.mulf %27, %27 : vector<10x32xf32>
    %cst_26 = arith.constant dense<0.000000e+00> : vector<10xf32>
    %29 = vector.multi_reduction <add>, %28, %cst_26 [1] : vector<10x32xf32> to vector<10xf32>
    %30 = vector.shape_cast %29 : vector<10xf32> to vector<10x1xf32>
    %cst_27 = arith.constant 3.200000e+01 : f32
    %31 = vector.broadcast %cst_27 : f32 to vector<10x1xf32>
    %32 = arith.divf %30, %31 : vector<10x1xf32>
    %33 = vector.broadcast %25 : vector<10x1xf32> to vector<10x32xf32>
    %34 = arith.subf %18, %33 : vector<10x32xf32>
    %cst_28 = arith.constant 9.99999997E-7 : f32
    %35 = vector.broadcast %cst_28 : f32 to vector<10x1xf32>
    %36 = arith.addf %32, %35 : vector<10x1xf32>
    %37 = math.rsqrt %36 : vector<10x1xf32>
    %38 = vector.broadcast %37 : vector<10x1xf32> to vector<10x32xf32>
    %39 = arith.mulf %34, %38 : vector<10x32xf32>
    %40 = vector.broadcast %20 : vector<1x32xf32> to vector<10x32xf32>
    %41 = arith.mulf %39, %40 : vector<10x32xf32>
    %42 = vector.broadcast %21 : vector<1x32xf32> to vector<10x32xf32>
    %43 = arith.addf %41, %42 : vector<10x32xf32>
    %c0_29 = arith.constant 0 : index
    %c0_30 = arith.constant 0 : index
    %44 = vector.load %arg8[%c0_29, %c0_30] : memref<32x96xf32, #tpu.memory_space<vmem>>, vector<32x96xf32>
    %cst_31 = arith.constant dense<0.000000e+00> : vector<10x96xf32>
    %45 = tpu.matmul %43, %44, %cst_31 {dimension_numbers = #tpu.dot_dimension_numbers<[1], [0], [0], [1], [0, 0, 1, 1], [], []>} : vector<10x32xf32>, vector<32x96xf32>, vector<10x96xf32> -> vector<10x96xf32>
    %c0_32 = arith.constant 0 : index
    %c0_33 = arith.constant 0 : index
    %46 = vector.load %arg9[%c0_32, %c0_33] : memref<1x96xf32, #tpu.memory_space<vmem>>, vector<1x96xf32>
    %47 = vector.broadcast %46 : vector<1x96xf32> to vector<10x96xf32>
    %48 = arith.addf %45, %47 : vector<10x96xf32>
    %49 = vector.extract_strided_slice %48 {offsets = [0, 0], sizes = [10, 32], strides = [1, 1]} : vector<10x96xf32> to vector<10x32xf32>
    %cst_34 = arith.constant 0.353553385 : f32
    %50 = vector.broadcast %cst_34 : f32 to vector<10x32xf32>
    %51 = arith.mulf %49, %50 : vector<10x32xf32>
    %52 = vector.extract_strided_slice %48 {offsets = [0, 32], sizes = [10, 32], strides = [1, 1]} : vector<10x96xf32> to vector<10x32xf32>
    %53 = vector.extract_strided_slice %48 {offsets = [0, 64], sizes = [10, 32], strides = [1, 1]} : vector<10x96xf32> to vector<10x32xf32>
    %54 = vector.extract_strided_slice %51 {offsets = [0, 0], sizes = [10, 8], strides = [1, 1]} : vector<10x32xf32> to vector<10x8xf32>
    %55 = vector.extract_strided_slice %52 {offsets = [0, 0], sizes = [10, 8], strides = [1, 1]} : vector<10x32xf32> to vector<10x8xf32>
    %cst_35 = arith.constant dense<0.000000e+00> : vector<10x10xf32>
    %56 = tpu.matmul %54, %55, %cst_35 {dimension_numbers = #tpu.dot_dimension_numbers<[1], [1], [0], [0], [0, 0, 1, 0], [], []>} : vector<10x8xf32>, vector<10x8xf32>, vector<10x10xf32> -> vector<10x10xf32>
    %57 = arith.addf %56, %19 : vector<10x10xf32>
    %cst_36 = arith.constant dense<0xFF800000> : vector<10xf32>
    %58 = vector.multi_reduction <maximumf>, %57, %cst_36 [1] : vector<10x10xf32> to vector<10xf32>
    %59 = vector.shape_cast %58 : vector<10xf32> to vector<10x1xf32>
    %60 = vector.broadcast %59 : vector<10x1xf32> to vector<10x10xf32>
    %61 = arith.subf %57, %60 : vector<10x10xf32>
    %62 = math.exp %61 : vector<10x10xf32>
    %cst_37 = arith.constant dense<0.000000e+00> : vector<10xf32>
    %63 = vector.multi_reduction <add>, %62, %cst_37 [1] : vector<10x10xf32> to vector<10xf32>
    %64 = vector.shape_cast %63 : vector<10xf32> to vector<10x1xf32>
    %65 = tpu.reciprocal %64 {approx = true} : vector<10x1xf32> -> vector<10x1xf32>
    %66 = vector.broadcast %65 : vector<10x1xf32> to vector<10x10xf32>
    %67 = arith.mulf %62, %66 : vector<10x10xf32>
    %68 = vector.extract_strided_slice %53 {offsets = [0, 0], sizes = [10, 8], strides = [1, 1]} : vector<10x32xf32> to vector<10x8xf32>
    %cst_38 = arith.constant dense<0.000000e+00> : vector<10x8xf32>
    %69 = tpu.matmul %67, %68, %cst_38 {dimension_numbers = #tpu.dot_dimension_numbers<[1], [0], [0], [1], [0, 0, 1, 1], [], []>} : vector<10x10xf32>, vector<10x8xf32>, vector<10x8xf32> -> vector<10x8xf32>
    %c0_39 = arith.constant 0 : index
    %c0_40 = arith.constant 0 : index
    %70 = vector.load %arg36[%c0_39, %c0_40] : memref<10x32xf32, #tpu.memory_space<vmem>>, vector<10x8xf32>
    tpu.vector_store %arg36[%c0_39, %c0_40], %69 {strides = array<i32>} : memref<10x32xf32, #tpu.memory_space<vmem>>, vector<10x8xf32>,
    %71 = vector.extract_strided_slice %51 {offsets = [0, 8], sizes = [10, 8], strides = [1, 1]} : vector<10x32xf32> to vector<10x8xf32>
    %72 = vector.extract_strided_slice %52 {offsets = [0, 8], sizes = [10, 8], strides = [1, 1]} : vector<10x32xf32> to vector<10x8xf32>
    %cst_41 = arith.constant dense<0.000000e+00> : vector<10x10xf32>
    %73 = tpu.matmul %71, %72, %cst_41 {dimension_numbers = #tpu.dot_dimension_numbers<[1], [1], [0], [0], [0, 0, 1, 0], [], []>} : vector<10x8xf32>, vector<10x8xf32>, vector<10x10xf32> -> vector<10x10xf32>
    %74 = arith.addf %73, %19 : vector<10x10xf32>
    %cst_42 = arith.constant dense<0xFF800000> : vector<10xf32>
    %75 = vector.multi_reduction <maximumf>, %74, %cst_42 [1] : vector<10x10xf32> to vector<10xf32>
    %76 = vector.shape_cast %75 : vector<10xf32> to vector<10x1xf32>
    %77 = vector.broadcast %76 : vector<10x1xf32> to vector<10x10xf32>
    %78 = arith.subf %74, %77 : vector<10x10xf32>
    %79 = math.exp %78 : vector<10x10xf32>
    %cst_43 = arith.constant dense<0.000000e+00> : vector<10xf32>
    %80 = vector.multi_reduction <add>, %79, %cst_43 [1] : vector<10x10xf32> to vector<10xf32>
    %81 = vector.shape_cast %80 : vector<10xf32> to vector<10x1xf32>
    %82 = tpu.reciprocal %81 {approx = true} : vector<10x1xf32> -> vector<10x1xf32>
    %83 = vector.broadcast %82 : vector<10x1xf32> to vector<10x10xf32>
    %84 = arith.mulf %79, %83 : vector<10x10xf32>
    %85 = vector.extract_strided_slice %53 {offsets = [0, 8], sizes = [10, 8], strides = [1, 1]} : vector<10x32xf32> to vector<10x8xf32>
    %cst_44 = arith.constant dense<0.000000e+00> : vector<10x8xf32>
    %86 = tpu.matmul %84, %85, %cst_44 {dimension_numbers = #tpu.dot_dimension_numbers<[1], [0], [0], [1], [0, 0, 1, 1], [], []>} : vector<10x10xf32>, vector<10x8xf32>, vector<10x8xf32> -> vector<10x8xf32>
    %c0_45 = arith.constant 0 : index
    %c8 = arith.constant 8 : index
    %87 = vector.load %arg36[%c0_45, %c8] : memref<10x32xf32, #tpu.memory_space<vmem>>, vector<10x8xf32>
    tpu.vector_store %arg36[%c0_45, %c8], %86 {strides = array<i32>} : memref<10x32xf32, #tpu.memory_space<vmem>>, vector<10x8xf32>,
    %88 = vector.extract_strided_slice %51 {offsets = [0, 16], sizes = [10, 8], strides = [1, 1]} : vector<10x32xf32> to vector<10x8xf32>
    %89 = vector.extract_strided_slice %52 {offsets = [0, 16], sizes = [10, 8], strides = [1, 1]} : vector<10x32xf32> to vector<10x8xf32>
    %cst_46 = arith.constant dense<0.000000e+00> : vector<10x10xf32>
    %90 = tpu.matmul %88, %89, %cst_46 {dimension_numbers = #tpu.dot_dimension_numbers<[1], [1], [0], [0], [0, 0, 1, 0], [], []>} : vector<10x8xf32>, vector<10x8xf32>, vector<10x10xf32> -> vector<10x10xf32>
    %91 = arith.addf %90, %19 : vector<10x10xf32>
    %cst_47 = arith.constant dense<0xFF800000> : vector<10xf32>
    %92 = vector.multi_reduction <maximumf>, %91, %cst_47 [1] : vector<10x10xf32> to vector<10xf32>
    %93 = vector.shape_cast %92 : vector<10xf32> to vector<10x1xf32>
    %94 = vector.broadcast %93 : vector<10x1xf32> to vector<10x10xf32>
    %95 = arith.subf %91, %94 : vector<10x10xf32>
    %96 = math.exp %95 : vector<10x10xf32>
    %cst_48 = arith.constant dense<0.000000e+00> : vector<10xf32>
    %97 = vector.multi_reduction <add>, %96, %cst_48 [1] : vector<10x10xf32> to vector<10xf32>
    %98 = vector.shape_cast %97 : vector<10xf32> to vector<10x1xf32>
    %99 = tpu.reciprocal %98 {approx = true} : vector<10x1xf32> -> vector<10x1xf32>
    %100 = vector.broadcast %99 : vector<10x1xf32> to vector<10x10xf32>
    %101 = arith.mulf %96, %100 : vector<10x10xf32>
    %102 = vector.extract_strided_slice %53 {offsets = [0, 16], sizes = [10, 8], strides = [1, 1]} : vector<10x32xf32> to vector<10x8xf32>
    %cst_49 = arith.constant dense<0.000000e+00> : vector<10x8xf32>
    %103 = tpu.matmul %101, %102, %cst_49 {dimension_numbers = #tpu.dot_dimension_numbers<[1], [0], [0], [1], [0, 0, 1, 1], [], []>} : vector<10x10xf32>, vector<10x8xf32>, vector<10x8xf32> -> vector<10x8xf32>
    %c0_50 = arith.constant 0 : index
    %c16 = arith.constant 16 : index
    %104 = vector.load %arg36[%c0_50, %c16] : memref<10x32xf32, #tpu.memory_space<vmem>>, vector<10x8xf32>
    tpu.vector_store %arg36[%c0_50, %c16], %103 {strides = array<i32>} : memref<10x32xf32, #tpu.memory_space<vmem>>, vector<10x8xf32>,
    %105 = vector.extract_strided_slice %51 {offsets = [0, 24], sizes = [10, 8], strides = [1, 1]} : vector<10x32xf32> to vector<10x8xf32>
    %106 = vector.extract_strided_slice %52 {offsets = [0, 24], sizes = [10, 8], strides = [1, 1]} : vector<10x32xf32> to vector<10x8xf32>
    %cst_51 = arith.constant dense<0.000000e+00> : vector<10x10xf32>
    %107 = tpu.matmul %105, %106, %cst_51 {dimension_numbers = #tpu.dot_dimension_numbers<[1], [1], [0], [0], [0, 0, 1, 0], [], []>} : vector<10x8xf32>, vector<10x8xf32>, vector<10x10xf32> -> vector<10x10xf32>
    %108 = arith.addf %107, %19 : vector<10x10xf32>
    %cst_52 = arith.constant dense<0xFF800000> : vector<10xf32>
    %109 = vector.multi_reduction <maximumf>, %108, %cst_52 [1] : vector<10x10xf32> to vector<10xf32>
    %110 = vector.shape_cast %109 : vector<10xf32> to vector<10x1xf32>
    %111 = vector.broadcast %110 : vector<10x1xf32> to vector<10x10xf32>
    %112 = arith.subf %108, %111 : vector<10x10xf32>
    %113 = math.exp %112 : vector<10x10xf32>
    %cst_53 = arith.constant dense<0.000000e+00> : vector<10xf32>
    %114 = vector.multi_reduction <add>, %113, %cst_53 [1] : vector<10x10xf32> to vector<10xf32>
    %115 = vector.shape_cast %114 : vector<10xf32> to vector<10x1xf32>
    %116 = tpu.reciprocal %115 {approx = true} : vector<10x1xf32> -> vector<10x1xf32>
    %117 = vector.broadcast %116 : vector<10x1xf32> to vector<10x10xf32>
    %118 = arith.mulf %113, %117 : vector<10x10xf32>
    %119 = vector.extract_strided_slice %53 {offsets = [0, 24], sizes = [10, 8], strides = [1, 1]} : vector<10x32xf32> to vector<10x8xf32>
    %cst_54 = arith.constant dense<0.000000e+00> : vector<10x8xf32>
    %120 = tpu.matmul %118, %119, %cst_54 {dimension_numbers = #tpu.dot_dimension_numbers<[1], [0], [0], [1], [0, 0, 1, 1], [], []>} : vector<10x10xf32>, vector<10x8xf32>, vector<10x8xf32> -> vector<10x8xf32>
    %c0_55 = arith.constant 0 : index
    %c24 = arith.constant 24 : index
    %121 = vector.load %arg36[%c0_55, %c24] : memref<10x32xf32, #tpu.memory_space<vmem>>, vector<10x8xf32>
    tpu.vector_store %arg36[%c0_55, %c24], %120 {strides = array<i32>} : memref<10x32xf32, #tpu.memory_space<vmem>>, vector<10x8xf32>,
    %c0_56 = arith.constant 0 : index
    %c0_57 = arith.constant 0 : index
    %122 = vector.load %arg36[%c0_56, %c0_57] : memref<10x32xf32, #tpu.memory_space<vmem>>, vector<10x32xf32>
    %c0_58 = arith.constant 0 : index
    %c0_59 = arith.constant 0 : index
    %123 = vector.load %arg10[%c0_58, %c0_59] : memref<32x32xf32, #tpu.memory_space<vmem>>, vector<32x32xf32>
    %cst_60 = arith.constant dense<0.000000e+00> : vector<10x32xf32>
    %124 = tpu.matmul %122, %123, %cst_60 {dimension_numbers = #tpu.dot_dimension_numbers<[1], [0], [0], [1], [0, 0, 1, 1], [], []>} : vector<10x32xf32>, vector<32x32xf32>, vector<10x32xf32> -> vector<10x32xf32>
    %c0_61 = arith.constant 0 : index
    %c0_62 = arith.constant 0 : index
    %125 = vector.load %arg11[%c0_61, %c0_62] : memref<1x32xf32, #tpu.memory_space<vmem>>, vector<1x32xf32>
    %126 = vector.broadcast %125 : vector<1x32xf32> to vector<10x32xf32>
    %127 = arith.addf %124, %126 : vector<10x32xf32>
    %128 = arith.addf %18, %127 : vector<10x32xf32>
    %c0_63 = arith.constant 0 : index
    %c0_64 = arith.constant 0 : index
    %129 = vector.load %arg12[%c0_63, %c0_64] : memref<1x32xf32, #tpu.memory_space<vmem>>, vector<1x32xf32>
    %c0_65 = arith.constant 0 : index
    %c0_66 = arith.constant 0 : index
    %130 = vector.load %arg13[%c0_65, %c0_66] : memref<1x32xf32, #tpu.memory_space<vmem>>, vector<1x32xf32>
    %cst_67 = arith.constant dense<0.000000e+00> : vector<10xf32>
    %131 = vector.multi_reduction <add>, %128, %cst_67 [1] : vector<10x32xf32> to vector<10xf32>
    %132 = vector.shape_cast %131 : vector<10xf32> to vector<10x1xf32>
    %cst_68 = arith.constant 3.200000e+01 : f32
    %133 = vector.broadcast %cst_68 : f32 to vector<10x1xf32>
    %134 = arith.divf %132, %133 : vector<10x1xf32>
    %135 = vector.broadcast %134 : vector<10x1xf32> to vector<10x32xf32>
    %136 = arith.subf %128, %135 : vector<10x32xf32>
    %137 = arith.mulf %136, %136 : vector<10x32xf32>
    %cst_69 = arith.constant dense<0.000000e+00> : vector<10xf32>
    %138 = vector.multi_reduction <add>, %137, %cst_69 [1] : vector<10x32xf32> to vector<10xf32>
    %139 = vector.shape_cast %138 : vector<10xf32> to vector<10x1xf32>
    %cst_70 = arith.constant 3.200000e+01 : f32
    %140 = vector.broadcast %cst_70 : f32 to vector<10x1xf32>
    %141 = arith.divf %139, %140 : vector<10x1xf32>
    %142 = vector.broadcast %134 : vector<10x1xf32> to vector<10x32xf32>
    %143 = arith.subf %128, %142 : vector<10x32xf32>
    %cst_71 = arith.constant 9.99999997E-7 : f32
    %144 = vector.broadcast %cst_71 : f32 to vector<10x1xf32>
    %145 = arith.addf %141, %144 : vector<10x1xf32>
    %146 = math.rsqrt %145 : vector<10x1xf32>
    %147 = vector.broadcast %146 : vector<10x1xf32> to vector<10x32xf32>
    %148 = arith.mulf %143, %147 : vector<10x32xf32>
    %149 = vector.broadcast %129 : vector<1x32xf32> to vector<10x32xf32>
    %150 = arith.mulf %148, %149 : vector<10x32xf32>
    %151 = vector.broadcast %130 : vector<1x32xf32> to vector<10x32xf32>
    %152 = arith.addf %150, %151 : vector<10x32xf32>
    %c0_72 = arith.constant 0 : index
    %c0_73 = arith.constant 0 : index
    %153 = vector.load %arg14[%c0_72, %c0_73] : memref<32x128xf32, #tpu.memory_space<vmem>>, vector<32x128xf32>
    %cst_74 = arith.constant dense<0.000000e+00> : vector<10x128xf32>
    %154 = tpu.matmul %152, %153, %cst_74 {dimension_numbers = #tpu.dot_dimension_numbers<[1], [0], [0], [1], [0, 0, 1, 1], [], []>} : vector<10x32xf32>, vector<32x128xf32>, vector<10x128xf32> -> vector<10x128xf32>
    %c0_75 = arith.constant 0 : index
    %c0_76 = arith.constant 0 : index
    %155 = vector.load %arg15[%c0_75, %c0_76] : memref<1x128xf32, #tpu.memory_space<vmem>>, vector<1x128xf32>
    %156 = vector.broadcast %155 : vector<1x128xf32> to vector<10x128xf32>
    %157 = arith.addf %154, %156 : vector<10x128xf32>
    %cst_77 = arith.constant 5.000000e-01 : f32
    %158 = vector.broadcast %cst_77 : f32 to vector<10x128xf32>
    %159 = arith.mulf %158, %157 : vector<10x128xf32>
    %cst_78 = arith.constant 4.471500e-02 : f32
    %160 = vector.broadcast %cst_78 : f32 to vector<10x128xf32>
    %161 = arith.mulf %160, %157 : vector<10x128xf32>
    %162 = arith.mulf %161, %157 : vector<10x128xf32>
    %163 = arith.mulf %162, %157 : vector<10x128xf32>
    %164 = arith.addf %157, %163 : vector<10x128xf32>
    %cst_79 = arith.constant 0.797884583 : f32
    %165 = vector.broadcast %cst_79 : f32 to vector<10x128xf32>
    %166 = arith.mulf %165, %164 : vector<10x128xf32>
    %167 = math.tanh %166 : vector<10x128xf32>
    %cst_80 = arith.constant 1.000000e+00 : f32
    %168 = vector.broadcast %cst_80 : f32 to vector<10x128xf32>
    %169 = arith.addf %168, %167 : vector<10x128xf32>
    %170 = arith.mulf %159, %169 : vector<10x128xf32>
    %c0_81 = arith.constant 0 : index
    %c0_82 = arith.constant 0 : index
    %171 = vector.load %arg16[%c0_81, %c0_82] : memref<128x32xf32, #tpu.memory_space<vmem>>, vector<128x32xf32>
    %cst_83 = arith.constant dense<0.000000e+00> : vector<10x32xf32>
    %172 = tpu.matmul %170, %171, %cst_83 {dimension_numbers = #tpu.dot_dimension_numbers<[1], [0], [0], [1], [0, 0, 1, 1], [], []>} : vector<10x128xf32>, vector<128x32xf32>, vector<10x32xf32> -> vector<10x32xf32>
    %c0_84 = arith.constant 0 : index
    %c0_85 = arith.constant 0 : index
    %173 = vector.load %arg17[%c0_84, %c0_85] : memref<1x32xf32, #tpu.memory_space<vmem>>, vector<1x32xf32>
    %174 = vector.broadcast %173 : vector<1x32xf32> to vector<10x32xf32>
    %175 = arith.addf %172, %174 : vector<10x32xf32>
    %176 = arith.addf %128, %175 : vector<10x32xf32>
    %c0_86 = arith.constant 0 : index
    %c0_87 = arith.constant 0 : index
    %177 = vector.load %arg18[%c0_86, %c0_87] : memref<1x32xf32, #tpu.memory_space<vmem>>, vector<1x32xf32>
    %c0_88 = arith.constant 0 : index
    %c0_89 = arith.constant 0 : index
    %178 = vector.load %arg19[%c0_88, %c0_89] : memref<1x32xf32, #tpu.memory_space<vmem>>, vector<1x32xf32>
    %cst_90 = arith.constant dense<0.000000e+00> : vector<10xf32>
    %179 = vector.multi_reduction <add>, %176, %cst_90 [1] : vector<10x32xf32> to vector<10xf32>
    %180 = vector.shape_cast %179 : vector<10xf32> to vector<10x1xf32>
    %cst_91 = arith.constant 3.200000e+01 : f32
    %181 = vector.broadcast %cst_91 : f32 to vector<10x1xf32>
    %182 = arith.divf %180, %181 : vector<10x1xf32>
    %183 = vector.broadcast %182 : vector<10x1xf32> to vector<10x32xf32>
    %184 = arith.subf %176, %183 : vector<10x32xf32>
    %185 = arith.mulf %184, %184 : vector<10x32xf32>
    %cst_92 = arith.constant dense<0.000000e+00> : vector<10xf32>
    %186 = vector.multi_reduction <add>, %185, %cst_92 [1] : vector<10x32xf32> to vector<10xf32>
    %187 = vector.shape_cast %186 : vector<10xf32> to vector<10x1xf32>
    %cst_93 = arith.constant 3.200000e+01 : f32
    %188 = vector.broadcast %cst_93 : f32 to vector<10x1xf32>
    %189 = arith.divf %187, %188 : vector<10x1xf32>
    %190 = vector.broadcast %182 : vector<10x1xf32> to vector<10x32xf32>
    %191 = arith.subf %176, %190 : vector<10x32xf32>
    %cst_94 = arith.constant 9.99999997E-7 : f32
    %192 = vector.broadcast %cst_94 : f32 to vector<10x1xf32>
    %193 = arith.addf %189, %192 : vector<10x1xf32>
    %194 = math.rsqrt %193 : vector<10x1xf32>
    %195 = vector.broadcast %194 : vector<10x1xf32> to vector<10x32xf32>
    %196 = arith.mulf %191, %195 : vector<10x32xf32>
    %197 = vector.broadcast %177 : vector<1x32xf32> to vector<10x32xf32>
    %198 = arith.mulf %196, %197 : vector<10x32xf32>
    %199 = vector.broadcast %178 : vector<1x32xf32> to vector<10x32xf32>
    %200 = arith.addf %198, %199 : vector<10x32xf32>
    %c0_95 = arith.constant 0 : index
    %c0_96 = arith.constant 0 : index
    %201 = vector.load %arg20[%c0_95, %c0_96] : memref<32x96xf32, #tpu.memory_space<vmem>>, vector<32x96xf32>
    %cst_97 = arith.constant dense<0.000000e+00> : vector<10x96xf32>
    %202 = tpu.matmul %200, %201, %cst_97 {dimension_numbers = #tpu.dot_dimension_numbers<[1], [0], [0], [1], [0, 0, 1, 1], [], []>} : vector<10x32xf32>, vector<32x96xf32>, vector<10x96xf32> -> vector<10x96xf32>
    %c0_98 = arith.constant 0 : index
    %c0_99 = arith.constant 0 : index
    %203 = vector.load %arg21[%c0_98, %c0_99] : memref<1x96xf32, #tpu.memory_space<vmem>>, vector<1x96xf32>
    %204 = vector.broadcast %203 : vector<1x96xf32> to vector<10x96xf32>
    %205 = arith.addf %202, %204 : vector<10x96xf32>
    %206 = vector.extract_strided_slice %205 {offsets = [0, 0], sizes = [10, 32], strides = [1, 1]} : vector<10x96xf32> to vector<10x32xf32>
    %cst_100 = arith.constant 0.353553385 : f32
    %207 = vector.broadcast %cst_100 : f32 to vector<10x32xf32>
    %208 = arith.mulf %206, %207 : vector<10x32xf32>
    %209 = vector.extract_strided_slice %205 {offsets = [0, 32], sizes = [10, 32], strides = [1, 1]} : vector<10x96xf32> to vector<10x32xf32>
    %210 = vector.extract_strided_slice %205 {offsets = [0, 64], sizes = [10, 32], strides = [1, 1]} : vector<10x96xf32> to vector<10x32xf32>
    %211 = vector.extract_strided_slice %208 {offsets = [0, 0], sizes = [10, 8], strides = [1, 1]} : vector<10x32xf32> to vector<10x8xf32>
    %212 = vector.extract_strided_slice %209 {offsets = [0, 0], sizes = [10, 8], strides = [1, 1]} : vector<10x32xf32> to vector<10x8xf32>
    %cst_101 = arith.constant dense<0.000000e+00> : vector<10x10xf32>
    %213 = tpu.matmul %211, %212, %cst_101 {dimension_numbers = #tpu.dot_dimension_numbers<[1], [1], [0], [0], [0, 0, 1, 0], [], []>} : vector<10x8xf32>, vector<10x8xf32>, vector<10x10xf32> -> vector<10x10xf32>
    %214 = arith.addf %213, %19 : vector<10x10xf32>
    %cst_102 = arith.constant dense<0xFF800000> : vector<10xf32>
    %215 = vector.multi_reduction <maximumf>, %214, %cst_102 [1] : vector<10x10xf32> to vector<10xf32>
    %216 = vector.shape_cast %215 : vector<10xf32> to vector<10x1xf32>
    %217 = vector.broadcast %216 : vector<10x1xf32> to vector<10x10xf32>
    %218 = arith.subf %214, %217 : vector<10x10xf32>
    %219 = math.exp %218 : vector<10x10xf32>
    %cst_103 = arith.constant dense<0.000000e+00> : vector<10xf32>
    %220 = vector.multi_reduction <add>, %219, %cst_103 [1] : vector<10x10xf32> to vector<10xf32>
    %221 = vector.shape_cast %220 : vector<10xf32> to vector<10x1xf32>
    %222 = tpu.reciprocal %221 {approx = true} : vector<10x1xf32> -> vector<10x1xf32>
    %223 = vector.broadcast %222 : vector<10x1xf32> to vector<10x10xf32>
    %224 = arith.mulf %219, %223 : vector<10x10xf32>
    %225 = vector.extract_strided_slice %210 {offsets = [0, 0], sizes = [10, 8], strides = [1, 1]} : vector<10x32xf32> to vector<10x8xf32>
    %cst_104 = arith.constant dense<0.000000e+00> : vector<10x8xf32>
    %226 = tpu.matmul %224, %225, %cst_104 {dimension_numbers = #tpu.dot_dimension_numbers<[1], [0], [0], [1], [0, 0, 1, 1], [], []>} : vector<10x10xf32>, vector<10x8xf32>, vector<10x8xf32> -> vector<10x8xf32>
    %c0_105 = arith.constant 0 : index
    %c0_106 = arith.constant 0 : index
    %227 = vector.load %arg36[%c0_105, %c0_106] : memref<10x32xf32, #tpu.memory_space<vmem>>, vector<10x8xf32>
    tpu.vector_store %arg36[%c0_105, %c0_106], %226 {strides = array<i32>} : memref<10x32xf32, #tpu.memory_space<vmem>>, vector<10x8xf32>,
    %228 = vector.extract_strided_slice %208 {offsets = [0, 8], sizes = [10, 8], strides = [1, 1]} : vector<10x32xf32> to vector<10x8xf32>
    %229 = vector.extract_strided_slice %209 {offsets = [0, 8], sizes = [10, 8], strides = [1, 1]} : vector<10x32xf32> to vector<10x8xf32>
    %cst_107 = arith.constant dense<0.000000e+00> : vector<10x10xf32>
    %230 = tpu.matmul %228, %229, %cst_107 {dimension_numbers = #tpu.dot_dimension_numbers<[1], [1], [0], [0], [0, 0, 1, 0], [], []>} : vector<10x8xf32>, vector<10x8xf32>, vector<10x10xf32> -> vector<10x10xf32>
    %231 = arith.addf %230, %19 : vector<10x10xf32>
    %cst_108 = arith.constant dense<0xFF800000> : vector<10xf32>
    %232 = vector.multi_reduction <maximumf>, %231, %cst_108 [1] : vector<10x10xf32> to vector<10xf32>
    %233 = vector.shape_cast %232 : vector<10xf32> to vector<10x1xf32>
    %234 = vector.broadcast %233 : vector<10x1xf32> to vector<10x10xf32>
    %235 = arith.subf %231, %234 : vector<10x10xf32>
    %236 = math.exp %235 : vector<10x10xf32>
    %cst_109 = arith.constant dense<0.000000e+00> : vector<10xf32>
    %237 = vector.multi_reduction <add>, %236, %cst_109 [1] : vector<10x10xf32> to vector<10xf32>
    %238 = vector.shape_cast %237 : vector<10xf32> to vector<10x1xf32>
    %239 = tpu.reciprocal %238 {approx = true} : vector<10x1xf32> -> vector<10x1xf32>
    %240 = vector.broadcast %239 : vector<10x1xf32> to vector<10x10xf32>
    %241 = arith.mulf %236, %240 : vector<10x10xf32>
    %242 = vector.extract_strided_slice %210 {offsets = [0, 8], sizes = [10, 8], strides = [1, 1]} : vector<10x32xf32> to vector<10x8xf32>
    %cst_110 = arith.constant dense<0.000000e+00> : vector<10x8xf32>
    %243 = tpu.matmul %241, %242, %cst_110 {dimension_numbers = #tpu.dot_dimension_numbers<[1], [0], [0], [1], [0, 0, 1, 1], [], []>} : vector<10x10xf32>, vector<10x8xf32>, vector<10x8xf32> -> vector<10x8xf32>
    %c0_111 = arith.constant 0 : index
    %c8_112 = arith.constant 8 : index
    %244 = vector.load %arg36[%c0_111, %c8_112] : memref<10x32xf32, #tpu.memory_space<vmem>>, vector<10x8xf32>
    tpu.vector_store %arg36[%c0_111, %c8_112], %243 {strides = array<i32>} : memref<10x32xf32, #tpu.memory_space<vmem>>, vector<10x8xf32>,
    %245 = vector.extract_strided_slice %208 {offsets = [0, 16], sizes = [10, 8], strides = [1, 1]} : vector<10x32xf32> to vector<10x8xf32>
    %246 = vector.extract_strided_slice %209 {offsets = [0, 16], sizes = [10, 8], strides = [1, 1]} : vector<10x32xf32> to vector<10x8xf32>
    %cst_113 = arith.constant dense<0.000000e+00> : vector<10x10xf32>
    %247 = tpu.matmul %245, %246, %cst_113 {dimension_numbers = #tpu.dot_dimension_numbers<[1], [1], [0], [0], [0, 0, 1, 0], [], []>} : vector<10x8xf32>, vector<10x8xf32>, vector<10x10xf32> -> vector<10x10xf32>
    %248 = arith.addf %247, %19 : vector<10x10xf32>
    %cst_114 = arith.constant dense<0xFF800000> : vector<10xf32>
    %249 = vector.multi_reduction <maximumf>, %248, %cst_114 [1] : vector<10x10xf32> to vector<10xf32>
    %250 = vector.shape_cast %249 : vector<10xf32> to vector<10x1xf32>
    %251 = vector.broadcast %250 : vector<10x1xf32> to vector<10x10xf32>
    %252 = arith.subf %248, %251 : vector<10x10xf32>
    %253 = math.exp %252 : vector<10x10xf32>
    %cst_115 = arith.constant dense<0.000000e+00> : vector<10xf32>
    %254 = vector.multi_reduction <add>, %253, %cst_115 [1] : vector<10x10xf32> to vector<10xf32>
    %255 = vector.shape_cast %254 : vector<10xf32> to vector<10x1xf32>
    %256 = tpu.reciprocal %255 {approx = true} : vector<10x1xf32> -> vector<10x1xf32>
    %257 = vector.broadcast %256 : vector<10x1xf32> to vector<10x10xf32>
    %258 = arith.mulf %253, %257 : vector<10x10xf32>
    %259 = vector.extract_strided_slice %210 {offsets = [0, 16], sizes = [10, 8], strides = [1, 1]} : vector<10x32xf32> to vector<10x8xf32>
    %cst_116 = arith.constant dense<0.000000e+00> : vector<10x8xf32>
    %260 = tpu.matmul %258, %259, %cst_116 {dimension_numbers = #tpu.dot_dimension_numbers<[1], [0], [0], [1], [0, 0, 1, 1], [], []>} : vector<10x10xf32>, vector<10x8xf32>, vector<10x8xf32> -> vector<10x8xf32>
    %c0_117 = arith.constant 0 : index
    %c16_118 = arith.constant 16 : index
    %261 = vector.load %arg36[%c0_117, %c16_118] : memref<10x32xf32, #tpu.memory_space<vmem>>, vector<10x8xf32>
    tpu.vector_store %arg36[%c0_117, %c16_118], %260 {strides = array<i32>} : memref<10x32xf32, #tpu.memory_space<vmem>>, vector<10x8xf32>,
    %262 = vector.extract_strided_slice %208 {offsets = [0, 24], sizes = [10, 8], strides = [1, 1]} : vector<10x32xf32> to vector<10x8xf32>
    %263 = vector.extract_strided_slice %209 {offsets = [0, 24], sizes = [10, 8], strides = [1, 1]} : vector<10x32xf32> to vector<10x8xf32>
    %cst_119 = arith.constant dense<0.000000e+00> : vector<10x10xf32>
    %264 = tpu.matmul %262, %263, %cst_119 {dimension_numbers = #tpu.dot_dimension_numbers<[1], [1], [0], [0], [0, 0, 1, 0], [], []>} : vector<10x8xf32>, vector<10x8xf32>, vector<10x10xf32> -> vector<10x10xf32>
    %265 = arith.addf %264, %19 : vector<10x10xf32>
    %cst_120 = arith.constant dense<0xFF800000> : vector<10xf32>
    %266 = vector.multi_reduction <maximumf>, %265, %cst_120 [1] : vector<10x10xf32> to vector<10xf32>
    %267 = vector.shape_cast %266 : vector<10xf32> to vector<10x1xf32>
    %268 = vector.broadcast %267 : vector<10x1xf32> to vector<10x10xf32>
    %269 = arith.subf %265, %268 : vector<10x10xf32>
    %270 = math.exp %269 : vector<10x10xf32>
    %cst_121 = arith.constant dense<0.000000e+00> : vector<10xf32>
    %271 = vector.multi_reduction <add>, %270, %cst_121 [1] : vector<10x10xf32> to vector<10xf32>
    %272 = vector.shape_cast %271 : vector<10xf32> to vector<10x1xf32>
    %273 = tpu.reciprocal %272 {approx = true} : vector<10x1xf32> -> vector<10x1xf32>
    %274 = vector.broadcast %273 : vector<10x1xf32> to vector<10x10xf32>
    %275 = arith.mulf %270, %274 : vector<10x10xf32>
    %276 = vector.extract_strided_slice %210 {offsets = [0, 24], sizes = [10, 8], strides = [1, 1]} : vector<10x32xf32> to vector<10x8xf32>
    %cst_122 = arith.constant dense<0.000000e+00> : vector<10x8xf32>
    %277 = tpu.matmul %275, %276, %cst_122 {dimension_numbers = #tpu.dot_dimension_numbers<[1], [0], [0], [1], [0, 0, 1, 1], [], []>} : vector<10x10xf32>, vector<10x8xf32>, vector<10x8xf32> -> vector<10x8xf32>
    %c0_123 = arith.constant 0 : index
    %c24_124 = arith.constant 24 : index
    %278 = vector.load %arg36[%c0_123, %c24_124] : memref<10x32xf32, #tpu.memory_space<vmem>>, vector<10x8xf32>
    tpu.vector_store %arg36[%c0_123, %c24_124], %277 {strides = array<i32>} : memref<10x32xf32, #tpu.memory_space<vmem>>, vector<10x8xf32>,
    %c0_125 = arith.constant 0 : index
    %c0_126 = arith.constant 0 : index
    %279 = vector.load %arg36[%c0_125, %c0_126] : memref<10x32xf32, #tpu.memory_space<vmem>>, vector<10x32xf32>
    %c0_127 = arith.constant 0 : index
    %c0_128 = arith.constant 0 : index
    %280 = vector.load %arg22[%c0_127, %c0_128] : memref<32x32xf32, #tpu.memory_space<vmem>>, vector<32x32xf32>
    %cst_129 = arith.constant dense<0.000000e+00> : vector<10x32xf32>
    %281 = tpu.matmul %279, %280, %cst_129 {dimension_numbers = #tpu.dot_dimension_numbers<[1], [0], [0], [1], [0, 0, 1, 1], [], []>} : vector<10x32xf32>, vector<32x32xf32>, vector<10x32xf32> -> vector<10x32xf32>
    %c0_130 = arith.constant 0 : index
    %c0_131 = arith.constant 0 : index
    %282 = vector.load %arg23[%c0_130, %c0_131] : memref<1x32xf32, #tpu.memory_space<vmem>>, vector<1x32xf32>
    %283 = vector.broadcast %282 : vector<1x32xf32> to vector<10x32xf32>
    %284 = arith.addf %281, %283 : vector<10x32xf32>
    %285 = arith.addf %176, %284 : vector<10x32xf32>
    %c0_132 = arith.constant 0 : index
    %c0_133 = arith.constant 0 : index
    %286 = vector.load %arg24[%c0_132, %c0_133] : memref<1x32xf32, #tpu.memory_space<vmem>>, vector<1x32xf32>
    %c0_134 = arith.constant 0 : index
    %c0_135 = arith.constant 0 : index
    %287 = vector.load %arg25[%c0_134, %c0_135] : memref<1x32xf32, #tpu.memory_space<vmem>>, vector<1x32xf32>
    %cst_136 = arith.constant dense<0.000000e+00> : vector<10xf32>
    %288 = vector.multi_reduction <add>, %285, %cst_136 [1] : vector<10x32xf32> to vector<10xf32>
    %289 = vector.shape_cast %288 : vector<10xf32> to vector<10x1xf32>
    %cst_137 = arith.constant 3.200000e+01 : f32
    %290 = vector.broadcast %cst_137 : f32 to vector<10x1xf32>
    %291 = arith.divf %289, %290 : vector<10x1xf32>
    %292 = vector.broadcast %291 : vector<10x1xf32> to vector<10x32xf32>
    %293 = arith.subf %285, %292 : vector<10x32xf32>
    %294 = arith.mulf %293, %293 : vector<10x32xf32>
    %cst_138 = arith.constant dense<0.000000e+00> : vector<10xf32>
    %295 = vector.multi_reduction <add>, %294, %cst_138 [1] : vector<10x32xf32> to vector<10xf32>
    %296 = vector.shape_cast %295 : vector<10xf32> to vector<10x1xf32>
    %cst_139 = arith.constant 3.200000e+01 : f32
    %297 = vector.broadcast %cst_139 : f32 to vector<10x1xf32>
    %298 = arith.divf %296, %297 : vector<10x1xf32>
    %299 = vector.broadcast %291 : vector<10x1xf32> to vector<10x32xf32>
    %300 = arith.subf %285, %299 : vector<10x32xf32>
    %cst_140 = arith.constant 9.99999997E-7 : f32
    %301 = vector.broadcast %cst_140 : f32 to vector<10x1xf32>
    %302 = arith.addf %298, %301 : vector<10x1xf32>
    %303 = math.rsqrt %302 : vector<10x1xf32>
    %304 = vector.broadcast %303 : vector<10x1xf32> to vector<10x32xf32>
    %305 = arith.mulf %300, %304 : vector<10x32xf32>
    %306 = vector.broadcast %286 : vector<1x32xf32> to vector<10x32xf32>
    %307 = arith.mulf %305, %306 : vector<10x32xf32>
    %308 = vector.broadcast %287 : vector<1x32xf32> to vector<10x32xf32>
    %309 = arith.addf %307, %308 : vector<10x32xf32>
    %c0_141 = arith.constant 0 : index
    %c0_142 = arith.constant 0 : index
    %310 = vector.load %arg26[%c0_141, %c0_142] : memref<32x128xf32, #tpu.memory_space<vmem>>, vector<32x128xf32>
    %cst_143 = arith.constant dense<0.000000e+00> : vector<10x128xf32>
    %311 = tpu.matmul %309, %310, %cst_143 {dimension_numbers = #tpu.dot_dimension_numbers<[1], [0], [0], [1], [0, 0, 1, 1], [], []>} : vector<10x32xf32>, vector<32x128xf32>, vector<10x128xf32> -> vector<10x128xf32>
    %c0_144 = arith.constant 0 : index
    %c0_145 = arith.constant 0 : index
    %312 = vector.load %arg27[%c0_144, %c0_145] : memref<1x128xf32, #tpu.memory_space<vmem>>, vector<1x128xf32>
    %313 = vector.broadcast %312 : vector<1x128xf32> to vector<10x128xf32>
    %314 = arith.addf %311, %313 : vector<10x128xf32>
    %cst_146 = arith.constant 5.000000e-01 : f32
    %315 = vector.broadcast %cst_146 : f32 to vector<10x128xf32>
    %316 = arith.mulf %315, %314 : vector<10x128xf32>
    %cst_147 = arith.constant 4.471500e-02 : f32
    %317 = vector.broadcast %cst_147 : f32 to vector<10x128xf32>
    %318 = arith.mulf %317, %314 : vector<10x128xf32>
    %319 = arith.mulf %318, %314 : vector<10x128xf32>
    %320 = arith.mulf %319, %314 : vector<10x128xf32>
    %321 = arith.addf %314, %320 : vector<10x128xf32>
    %cst_148 = arith.constant 0.797884583 : f32
    %322 = vector.broadcast %cst_148 : f32 to vector<10x128xf32>
    %323 = arith.mulf %322, %321 : vector<10x128xf32>
    %324 = math.tanh %323 : vector<10x128xf32>
    %cst_149 = arith.constant 1.000000e+00 : f32
    %325 = vector.broadcast %cst_149 : f32 to vector<10x128xf32>
    %326 = arith.addf %325, %324 : vector<10x128xf32>
    %327 = arith.mulf %316, %326 : vector<10x128xf32>
    %c0_150 = arith.constant 0 : index
    %c0_151 = arith.constant 0 : index
    %328 = vector.load %arg28[%c0_150, %c0_151] : memref<128x32xf32, #tpu.memory_space<vmem>>, vector<128x32xf32>
    %cst_152 = arith.constant dense<0.000000e+00> : vector<10x32xf32>
    %329 = tpu.matmul %327, %328, %cst_152 {dimension_numbers = #tpu.dot_dimension_numbers<[1], [0], [0], [1], [0, 0, 1, 1], [], []>} : vector<10x128xf32>, vector<128x32xf32>, vector<10x32xf32> -> vector<10x32xf32>
    %c0_153 = arith.constant 0 : index
    %c0_154 = arith.constant 0 : index
    %330 = vector.load %arg29[%c0_153, %c0_154] : memref<1x32xf32, #tpu.memory_space<vmem>>, vector<1x32xf32>
    %331 = vector.broadcast %330 : vector<1x32xf32> to vector<10x32xf32>
    %332 = arith.addf %329, %331 : vector<10x32xf32>
    %333 = arith.addf %285, %332 : vector<10x32xf32>
    %c0_155 = arith.constant 0 : index
    %c0_156 = arith.constant 0 : index
    %334 = vector.load %arg30[%c0_155, %c0_156] : memref<1x32xf32, #tpu.memory_space<vmem>>, vector<1x32xf32>
    %c0_157 = arith.constant 0 : index
    %c0_158 = arith.constant 0 : index
    %335 = vector.load %arg31[%c0_157, %c0_158] : memref<1x32xf32, #tpu.memory_space<vmem>>, vector<1x32xf32>
    %cst_159 = arith.constant dense<0.000000e+00> : vector<10xf32>
    %336 = vector.multi_reduction <add>, %333, %cst_159 [1] : vector<10x32xf32> to vector<10xf32>
    %337 = vector.shape_cast %336 : vector<10xf32> to vector<10x1xf32>
    %cst_160 = arith.constant 3.200000e+01 : f32
    %338 = vector.broadcast %cst_160 : f32 to vector<10x1xf32>
    %339 = arith.divf %337, %338 : vector<10x1xf32>
    %340 = vector.broadcast %339 : vector<10x1xf32> to vector<10x32xf32>
    %341 = arith.subf %333, %340 : vector<10x32xf32>
    %342 = arith.mulf %341, %341 : vector<10x32xf32>
    %cst_161 = arith.constant dense<0.000000e+00> : vector<10xf32>
    %343 = vector.multi_reduction <add>, %342, %cst_161 [1] : vector<10x32xf32> to vector<10xf32>
    %344 = vector.shape_cast %343 : vector<10xf32> to vector<10x1xf32>
    %cst_162 = arith.constant 3.200000e+01 : f32
    %345 = vector.broadcast %cst_162 : f32 to vector<10x1xf32>
    %346 = arith.divf %344, %345 : vector<10x1xf32>
    %347 = vector.broadcast %339 : vector<10x1xf32> to vector<10x32xf32>
    %348 = arith.subf %333, %347 : vector<10x32xf32>
    %cst_163 = arith.constant 9.99999997E-7 : f32
    %349 = vector.broadcast %cst_163 : f32 to vector<10x1xf32>
    %350 = arith.addf %346, %349 : vector<10x1xf32>
    %351 = math.rsqrt %350 : vector<10x1xf32>
    %352 = vector.broadcast %351 : vector<10x1xf32> to vector<10x32xf32>
    %353 = arith.mulf %348, %352 : vector<10x32xf32>
    %354 = vector.broadcast %334 : vector<1x32xf32> to vector<10x32xf32>
    %355 = arith.mulf %353, %354 : vector<10x32xf32>
    %356 = vector.broadcast %335 : vector<1x32xf32> to vector<10x32xf32>
    %357 = arith.addf %355, %356 : vector<10x32xf32>
    %c0_164 = arith.constant 0 : index
    %c0_165 = arith.constant 0 : index
    %358 = vector.load %arg32[%c0_164, %c0_165] : memref<32x128xf32, #tpu.memory_space<vmem>>, vector<32x128xf32>
    %cst_166 = arith.constant dense<0.000000e+00> : vector<10x128xf32>
    %359 = tpu.matmul %357, %358, %cst_166 {dimension_numbers = #tpu.dot_dimension_numbers<[1], [0], [0], [1], [0, 0, 1, 1], [], []>} : vector<10x32xf32>, vector<32x128xf32>, vector<10x128xf32> -> vector<10x128xf32>
    %c0_167 = arith.constant 0 : index
    %c0_168 = arith.constant 0 : index
    %360 = vector.load %arg33[%c0_167, %c0_168] : memref<1x128xf32, #tpu.memory_space<vmem>>, vector<1x128xf32>
    %361 = vector.broadcast %360 : vector<1x128xf32> to vector<10x128xf32>
    %362 = arith.addf %359, %361 : vector<10x128xf32>
    %363 = vector.extract_strided_slice %362 {offsets = [0, 0], sizes = [1, 128], strides = [1, 1]} : vector<10x128xf32> to vector<1x128xf32>
    %c0_169 = arith.constant 0 : index
    %c0_170 = arith.constant 0 : index
    %364 = vector.load %arg34[%c0_169, %c0_170] : memref<2x128xf32, #tpu.memory_space<vmem>>, vector<1x128xf32>
    tpu.vector_store %arg34[%c0_169, %c0_170], %363 {strides = array<i32>} : memref<2x128xf32, #tpu.memory_space<vmem>>, vector<1x128xf32>,
    %365 = vector.extract_strided_slice %362 {offsets = [5, 0], sizes = [1, 128], strides = [1, 1]} : vector<10x128xf32> to vector<1x128xf32>
    %c1_171 = arith.constant 1 : index
    %c0_172 = arith.constant 0 : index
    %366 = vector.load %arg34[%c1_171, %c0_172] : memref<2x128xf32, #tpu.memory_space<vmem>>, vector<1x128xf32>
    tpu.vector_store %arg34[%c1_171, %c0_172], %365 {strides = array<i32>} : memref<2x128xf32, #tpu.memory_space<vmem>>, vector<1x128xf32>,
    return
  }
}

</mosaic_0001>

<bundles_post_ra>
// kernel: vit_forward.1
= control target key start
LH: loop header
LB: loop body
LE: loop exit
PB: predicated region body
PF: predicated region fallthrough
CT: control target
= control target key end

     0   :  { %s2092_s6 = smov 1   ;;  %s2093_s10 = smov 2   ;;  %s2789_s0 = inlined_call_operand.smem [shape: u32[35], index: -1, kind: input, shape index: {}] }
   0x1   :  { %s2150_s5 = sld [smem:[%s2789_s0]]   ;;  %s2094_s14 = smov 3  }
   0x2   :  { %s2155_s9 = sld [smem:[%s2789_s0 + %s2092_s6]]   ;;  %s2095_s18 = smov 4  }
   0x3   :  { %s2160_s13 = sld [smem:[%s2789_s0 + %s2093_s10]]   ;;  %s2096_s22 = smov 5  }
   0x4   :  { %s2165_s17 = sld [smem:[%s2789_s0 + %s2094_s14]]   ;;  %s2097_s26 = smov 6  }
   0x5   :  { %s2170_s21 = sld [smem:[%s2789_s0 + %s2095_s18]]   ;;  %s2098_s30 = smov 7  }
   0x6   :  { %s2175_s25 = sld [smem:[%s2789_s0 + %s2096_s22]]   ;;  %s2099_s4 = smov 8  }
   0x7   :  { %s2180_s29 = sld [smem:[%s2789_s0 + %s2097_s26]]   ;;  %s2100_s10 = smov 9  }
   0x8   :  { %s2185_s3 = sld [smem:[%s2789_s0 + %s2098_s30]]   ;;  %s2101_s15 = smov 10  }
   0x9   :  { %s2190_s8 = sld [smem:[%s2789_s0 + %s2099_s4]]   ;;  %s2102_s20 = smov 11  }
   0xa   :  { %s2195_s14 = sld [smem:[%s2789_s0 + %s2100_s10]]   ;;  %s2103_s26 = smov 12  }
   0xb   :  { %s2200_s19 = sld [smem:[%s2789_s0 + %s2101_s15]]   ;;  %s2104_s1 = smov 13  }
   0xc   :  { %s2205_s24 = sld [smem:[%s2789_s0 + %s2102_s20]]   ;;  %s2105_s7 = smov 14  }
   0xd   :  { %s2210_s30 = sld [smem:[%s2789_s0 + %s2103_s26]]   ;;  %s2106_s15 = smov 15  }
   0xe   :  { %s2215_s6 = sld [smem:[%s2789_s0 + %s2104_s1]]   ;;  %s2107_s22 = smov 16  }
   0xf   :  { %s2220_s12 = sld [smem:[%s2789_s0 + %s2105_s7]]   ;;  %s2108_s28 = smov 17  }
  0x10   :  { %s2225_s20 = sld [smem:[%s2789_s0 + %s2106_s15]]   ;;  %s2109_s7 = smov 18  }
  0x11   :  { %s2230_s27 = sld [smem:[%s2789_s0 + %s2107_s22]]   ;;  %s2110_s15 = smov 19  }
  0x12   :  { %s2235_s4 = sld [smem:[%s2789_s0 + %s2108_s28]]   ;;  %s2111_s22 = smov 20  }
  0x13   :  { %2797 = sst [smem:[#allocation7_spill]] %s2210_s30  ;;  %s2112_s28 = smov 21  }
  0x14   :  { %2798 = sst [smem:[#allocation8_spill]] %s2215_s6 }
  0x15   :  { %s2240_s6 = sld [smem:[%s2789_s0 + %s2109_s7]]   ;;  %s2113_s7 = smov 22  }
  0x16   :  { %2799 = sst [smem:[#allocation9_spill]] %s2225_s20 }
  0x17   :  { %s2245_s20 = sld [smem:[%s2789_s0 + %s2110_s15]]   ;;  %s2114_s15 = smov 23  }
  0x18   :  { %2800 = sst [smem:[#allocation10_spill]] %s2235_s4 }
  0x19   :  { %s2250_s30 = sld [smem:[%s2789_s0 + %s2111_s22]]   ;;  %s2115_s22 = smov 24  }
  0x1a   :  { %s2255_s4 = sld [smem:[%s2789_s0 + %s2112_s28]]   ;;  %s2116_s28 = smov 25  }
  0x1b   :  { %2801 = sst [smem:[#allocation11_spill]] %s2240_s6 }
  0x1c   :  { %s2260_s6 = sld [smem:[%s2789_s0 + %s2113_s7]]   ;;  %s2117_s7 = smov 26  }
  0x1d   :  { %2802 = sst [smem:[#allocation12_spill]] %s2245_s20 }
  0x1e   :  { %s2265_s20 = sld [smem:[%s2789_s0 + %s2114_s15]]   ;;  %s2118_s15 = smov 27  }
  0x1f   :  { %2803 = sst [smem:[#allocation13_spill]] %s2250_s30 }
  0x20   :  { %2804 = sst [smem:[#allocation14_spill]] %s2255_s4 }
  0x21   :  { %s2270_s30 = sld [smem:[%s2789_s0 + %s2115_s22]]   ;;  %s2119_s22 = smov 28  }
  0x22   :  { %2805 = sst [smem:[#allocation15_spill]] %s2260_s6 }
  0x23   :  { %s2275_s4 = sld [smem:[%s2789_s0 + %s2116_s28]]   ;;  %s2120_s28 = smov 29  }
  0x24   :  { %2806 = sst [smem:[#allocation16_spill]] %s2265_s20 }
  0x25   :  { %s2280_s6 = sld [smem:[%s2789_s0 + %s2117_s7]]   ;;  %s2121_s7 = smov 30  }
  0x26   :  { %s2285_s20 = sld [smem:[%s2789_s0 + %s2118_s15]]   ;;  %s2122_s15 = smov 31  }
  0x27   :  { %2807 = sst [smem:[#allocation17_spill]] %s2270_s30 }
  0x28   :  { %s2290_s30 = sld [smem:[%s2789_s0 + %s2119_s22]]   ;;  %s2123_s22 = smov 32  }
  0x29   :  { %2808 = sst [smem:[#allocation18_spill]] %s2275_s4 }
  0x2a   :  { %s2295_s4 = sld [smem:[%s2789_s0 + %s2120_s28]]   ;;  %s2124_s28 = smov 33  }
  0x2b   :  { %2809 = sst [smem:[#allocation19_spill]] %s2280_s6 }
  0x2c   :  { %2810 = sst [smem:[#allocation20_spill]] %s2285_s20 }
  0x2d   :  { %s2300_s6 = sld [smem:[%s2789_s0 + %s2121_s7]]   ;;  %s2125_s7 = smov 34  }
  0x2e   :  { %2811 = sst [smem:[#allocation21_spill]] %s2290_s30 }
  0x2f   :  { %s2305_s20 = sld [smem:[%s2789_s0 + %s2122_s15]]  }
  0x30   :  { %2812 = sst [smem:[#allocation22_spill]] %s2295_s4 }
  0x31   :  { %s2310_s30 = sld [smem:[%s2789_s0 + %s2123_s22]]  }
  0x32   :  { %s2315_s4 = sld [smem:[%s2789_s0 + %s2124_s28]]  }
  0x33   :  { %2813 = sst [smem:[#allocation23_spill]] %s2300_s6 }
  0x34   :  { %s2320_s6 = sld [smem:[%s2789_s0 + %s2125_s7]]  }
  0x35   :  { %v160_v0 = vld [vmem:[%s2155_s9 + $0x78] sm:$0xff]  ;;  %v159_v1 = vld [vmem:[%s2155_s9 + $0x70] sm:$0xff]  ;;  %v158_v2 = vld [vmem:[%s2155_s9 + $0x68] sm:$0xff] }
  0x36   :  { %177 = vmatpush.msra.mxu0 %v160_v0  ;;  %v168_v3 = vld [vmem:[%s2155_s9 + $0xb8] sm:$0xff]  ;;  %v157_v4 = vld [vmem:[%s2155_s9 + $0x60] sm:$0xff]  ;;  %v167_v5 = vld [vmem:[%s2155_s9 + $0xb0] sm:$0xff] }
  0x37   :  { %205 = vmatpush.msra.mxu1 %v168_v3  ;;  %v166_v6 = vld [vmem:[%s2155_s9 + $0xa8] sm:$0xff]  ;;  %v156_v7 = vld [vmem:[%s2155_s9 + $0x58] sm:$0xff]  ;;  %v155_v8 = vld [vmem:[%s2155_s9 + $0x50] sm:$0xff] }
  0x38   :  { %178 = vmatpush.msra.mxu0 %v159_v1  ;;  %v165_v9 = vld [vmem:[%s2155_s9 + $0xa0] sm:$0xff]  ;;  %v154_v10 = vld [vmem:[%s2155_s9 + $0x48] sm:$0xff]  ;;  %v164_v11 = vld [vmem:[%s2155_s9 + $0x98] sm:$0xff] }
  0x39   :  { %206 = vmatpush.msra.mxu1 %v167_v5  ;;  %v163_v12 = vld [vmem:[%s2155_s9 + $0x90] sm:$0xff]  ;;  %v153_v13 = vld [vmem:[%s2155_s9 + $0x40] sm:$0xff]  ;;  %v162_v14 = vld [vmem:[%s2155_s9 + $0x88] sm:$0xff] }
  0x3a   :  { %179 = vmatpush.msra.mxu0 %v158_v2  ;;  %v152_v15 = vld [vmem:[%s2155_s9 + $0x38] sm:$0xff]  ;;  %v161_v16 = vld [vmem:[%s2155_s9 + $0x80] sm:$0xff] }
  0x3b   :  { %207 = vmatpush.msra.mxu1 %v166_v6 }
  0x3c   :  { %180 = vmatpush.msra.mxu0 %v157_v4 }
  0x3d   :  { %208 = vmatpush.msra.mxu1 %v165_v9 }
  0x3e   :  { %181 = vmatpush.msra.mxu0 %v156_v7 }
  0x3f   :  { %209 = vmatpush.msra.mxu1 %v164_v11 }
  0x40   :  { %182 = vmatpush.msra.mxu0 %v155_v8 }
  0x41   :  { %210 = vmatpush.msra.mxu1 %v163_v12 }
  0x42   :  { %183 = vmatpush.msra.mxu0 %v154_v10 }
  0x44   :  { %184 = vmatpush.msra.mxu0 %v153_v13 }
  0x45   :  { %74 = vsyncpa [#allocation5], 0  ;;  %v151_v17 = vld [vmem:[%s2155_s9 + $0x30] sm:$0xff]  ;;  %211 = vmatpush.msra.mxu1 %v162_v14  ;;  %v144_v18 = vld [vmem:[%s2150_s5 + $0x8] sm:$0xff]  ;;  %vm173_vm0 = vcmask 523264   ;;  %vm221_vm1 = vcmask 253952  }
  0x46   :  { %185 = vmatpush.msra.mxu0 %v152_v15  ;;  %v150_v19 = vld [vmem:[%s2155_s9 + $0x28] sm:$0xff]  ;;  %v149_v20 = vld [vmem:[%s2155_s9 + $0x20] sm:$0xff]  ;;  %v148_v21 = vld [vmem:[%s2155_s9 + $0x18] sm:$0xff]  ;;  %vm224_vm2 = vcmask 257024   ;;  %vm231_vm3 = vcmask 261124   ;;  %vm239_vm4 = vcmask 261120  }
  0x47   :  { %212 = vmatpush.msra.mxu1 %v161_v16  ;;  %v147_v22 = vld [vmem:[%s2155_s9 + $0x10] sm:$0xff]  ;;  %v146_v23 = vld [vmem:[%s2155_s9 + $0x8] sm:$0xff]  ;;  %v145_v24 = vld [vmem:[%s2155_s9] sm:$0xff]  ;;  %vm2795_vm5 = vcmask 254976   ;;  %v2126_v42 = vmov 32.0   ;;  %s2127_s0 = smov 88  }
  0x48   :  { %186 = vmatpush.msra.mxu0 %v151_v17  ;;  %1825 = vmatmul.msk.f32.vlgmr.msra.gmra.mxu1 %vm173_vm0, %v144_v18  ;;  %v143_v25 = vld [vmem:[%s2150_s5] sm:$0xff]  ;;  %1970 = vrcp.f32 %v2126_v42  ;;  %v305_v59 = vld [vmem:[%s2190_s8 + $0x18] sm:$0xff]  ;;  %v304_v60 = vld [vmem:[%s2190_s8 + $0x10] sm:$0xff]  ;;  %s2128_s5 = smov 120   ;;  %s2129_s9 = smov 72   ;;  %vm347_vm13 = vcmask 64512  }
  0x49   :  { %v217_v26 = vld [vmem:[%s2165_s17] sm:$0x1]  ;;  %v220_v30 = vld [vmem:[%s2170_s21 + $0x1] sm:$0xf]  ;;  %328 = vmatpush.msra.mxu2 %v305_v59  ;;  %v303_v61 = vld [vmem:[%s2190_s8 + $0x8] sm:$0xff]  ;;  %s2131_s17 = smov 104  }
  0x4a   :  { %187 = vmatpush.msra.mxu0 %v150_v19  ;;  %v218_v27 = vld [vmem:[%s2170_s21] sm:$0x1]  ;;  %v228_v34 = vrot.slane %v220_v30, 4  ;;  %vm381_vm14 = vcmask 80896   ;;  %vm385_vm15 = vcmask 74752   ;;  %s2132_s21 = smov 64  }
  0x4b   :  { %v219_v28 = vadd.f32 %v218_v27, %v217_v26  ;;  %v1950_v29 = vld [vmem:[%s2160_s13] ss:$0 sm:$0xff]  ;;  %329 = vmatpush.msra.mxu2 %v304_v60  ;;  %s2130_s13 = smov 96   ;;  %vm416_vm0 = vcmask 1041408   ;;  %s2137_s15 = smov 40  }
  0x4c   :  { %188 = vmatpush.msra.mxu0 %v149_v20  ;;  %v302_v62 = vld [vmem:[%s2190_s8] sm:$0xff]  ;;  %s2135_s8 = smov 56   ;;  %s2138_s16 = smov 8  }
  0x4d   :  { %222 = vst.msk [vmem:[#allocation2] sm:$0x1] %vm221_vm1, %v219_v28  ;;  %330 = vmatpush.msra.mxu2 %v303_v61  ;;  %v1951_v13 = vld [vmem:[%s2180_s29] ss:$0 sm:$0xff]  ;;  %s2133_s29 = smov 80   ;;  %s2139_s18 = smov 24  }
  0x4e   :  { %189 = vmatpush.msra.mxu0 %v148_v21  ;;  %226 = vst.msk [vmem:[#allocation2 + $0x5] sm:$0x1] %vm221_vm1, %v219_v28  ;;  %v1971_v43 = vpop.eup %1970  ;;  %v1952_v17 = vld [vmem:[%s2185_s3] ss:$0 sm:$0xff]  ;;  %s2134_s3 = smov 112   ;;  %vm443_vm1 = vcmask 58368  }
  0x4f   :  { %v248_v44 = vmul.f32 32.0, %v1971_v43  ;;  %vm252_vm6 = vweird.f32 %v1971_v43  ;;  %331 = vmatpush.msra.mxu2 %v302_v62  ;;  %v1953_v27 = vld [vmem:[%s2195_s14] ss:$0 sm:$0xff]  ;;  %s2136_s14 = smov 48   ;;  %s2140_s22 = smov 16  }
  0x50   :  { %190 = vmatpush.msra.mxu0 %v147_v22  ;;  %s2817_s23 = sld [smem:[#allocation10_spill]] }
  0x51   :  { %v249_v45 = vsub.f32 1.0, %v248_v44  ;;  %s2819_s26 = sld [smem:[#allocation11_spill]] }
  0x52   :  { %191 = vmatpush.msra.mxu0 %v146_v23  ;;  %s2820_s28 = sld [smem:[#allocation12_spill]] }
  0x53   :  { %v250_v46 = vmul.f32 %v1971_v43, %v249_v45  ;;  %v2414_v45 = vld [vmem:[%s2175_s25] sm:$0xff]  ;;  %s2821_s1 = sld [smem:[#allocation14_spill]] }
  0x54   :  { %192 = vmatpush.msra.mxu0 %v145_v24  ;;  %s2823_s2 = sld [smem:[#allocation16_spill]] }
  0x55   :  { %193 = vmatmul.f32.vlgmr.msra.gmra.mxu0 %v143_v25  ;;  %v251_v47 = vadd.f32 %v1971_v43, %v250_v46  ;;  %v2417_v46 = vld [vmem:[%s2175_s25 + $0x8] sm:$0x3]  ;;  %s2826_s7 = sld [smem:[#allocation19_spill]] }
  0x56   :  { %s2829_s10 = sld [smem:[#allocation17_spill]] }
  0x57   :  { %v2360_v48 = vsel %vm252_vm6, %v1971_v43, %v251_v47  ;;  %vm2796_vm6 = vcmask 189568   ;;  %s2830_s11 = sld [smem:[#allocation18_spill]] }
  0xc5   :  { %v214_v32 = vpop.f32.mrf.mxu1 }
  0xd2   :  { %v194_v31 = vpop.f32.mrf.mxu0 }
  0xd3   :  { %v195_v33 = vadd.f32 %v1950_v29, %v194_v31 }
  0xd5   :  { %v215_v35 = vadd.f32 %v214_v32, %v195_v33 }
  0xd7   :  { %v223_v36 = vadd.f32 %v220_v30, %v215_v35  ;;  %v230_v37 = vadd.f32 %v228_v34, %v215_v35 }
  0xd9   :  { %225 = vst.msk [vmem:[#allocation2 + $0x1] sm:$0xf] %vm224_vm2, %v223_v36  ;;  %vm550_vm2 = vcmask 130112  }
  0xda   :  { %232 = vst.msk [vmem:[#allocation2 + $0x2] sm:$0xf0] %vm231_vm3, %v230_v37  ;;  %vm552_vm3 = vcmask 123968  }
  0xe1   :  { %v2352_v38 = vld [vmem:[#allocation2] sm:$0xff]  ;;  %v2356_v40 = vld [vmem:[#allocation2 + $0x8] sm:$0x3] }
  0xe2   :  { %v240_v39 = vsel %vm239_vm4, %v2352_v38, 0.0  ;;  %v244_v41 = vsel %vm2795_vm5, %v2356_v40, 0.0 }
  0xe3   :  { %241 = vadd.xlane.f32.xlu0 %v240_v39 }
  0xeb   :  { %245 = vadd.xlane.f32.xlu0 %v244_v41 }
 0x156   :  { %v242_v49 = vpop.xlane.xlu0 %241 }
 0x157   :  { %v254_v50 = vmul.f32 %v2360_v48, %v242_v49 }
 0x159   :  { %v256_v51 = vsub.f32 %v2352_v38, %v254_v50 }
 0x15b   :  { %v258_v52 = vmul.f32 %v256_v51, %v256_v51 }
 0x15d   :  { %v260_v53 = vsel %vm239_vm4, %v258_v52, 0.0 }
 0x15e   :  { %261 = vadd.xlane.f32.xlu1 %v260_v53  ;;  %v246_v54 = vpop.xlane.xlu0 %245 }
 0x15f   :  { %v255_v55 = vmul.f32 %v2360_v48, %v246_v54 }
 0x161   :  { %v257_v56 = vsub.f32 %v2356_v40, %v255_v55 }
 0x163   :  { %v259_v57 = vmul.f32 %v257_v56, %v257_v56 }
 0x165   :  { %v263_v58 = vsel %vm2795_vm5, %v259_v57, 0.0 }
 0x166   :  { %264 = vadd.xlane.f32.xlu1 %v263_v58 }
 0x1d1   :  { %v262_v63 = vpop.xlane.xlu1 %261 }
 0x1d2   :  { %v266_v0 = vmul.f32 %v262_v63, %v2360_v48 }
 0x1d4   :  { %v268_v1 = vadd.f32 1e-06, %v266_v0 }
 0x1d6   :  { %1972 = vrsqrt.f32 %v268_v1  ;;  %vm276_vm8 = vweird.f32 %v268_v1 }
 0x1d9   :  { %v265_v2 = vpop.xlane.xlu1 %264 }
 0x1da   :  { %v267_v3 = vmul.f32 %v265_v2, %v2360_v48 }
 0x1dc   :  { %v1973_v4 = vpop.eup %1972  ;;  %v269_v5 = vadd.f32 1e-06, %v267_v3 }
 0x1dd   :  { %v271_v6 = vmul.f32 %v1973_v4, %v268_v1  ;;  %vm277_vm7 = vweird.f32 %v1973_v4 }
 0x1de   :  { %1974 = vrsqrt.f32 %v269_v5  ;;  %vm278_vm9 = vmor %vm276_vm8, %vm277_vm7  ;;  %vm286_vm11 = vweird.f32 %v269_v5  ;;  %vm659_vm7 = vcmask 195712   ;;  %vm768_vm8 = vcmask 261312  }
 0x1df   :  { %v272_v7 = vmul.f32 %v1973_v4, %v271_v6 }
 0x1e1   :  { %v273_v8 = vmul.f32 0.5, %v272_v7 }
 0x1e3   :  { %v274_v9 = vsub.f32 1.5, %v273_v8 }
 0x1e4   :  { %v1975_v10 = vpop.eup %1974 }
 0x1e5   :  { %v275_v11 = vmul.f32 %v1973_v4, %v274_v9  ;;  %v281_v12 = vmul.f32 %v1975_v10, %v269_v5  ;;  %vm287_vm10 = vweird.f32 %v1975_v10 }
 0x1e6   :  { %vm288_vm12 = vmor %vm286_vm11, %vm287_vm10 }
 0x1e7   :  { %v279_v14 = vsel %vm278_vm9, %v1973_v4, %v275_v11  ;;  %v282_v15 = vmul.f32 %v1975_v10, %v281_v12  ;;  %vm2794_vm9 = vcmask 255168  }
 0x1e8   :  { %v290_v16 = vmul.f32 %v279_v14, %v256_v51 }
 0x1e9   :  { %v283_v18 = vmul.f32 0.5, %v282_v15 }
 0x1ea   :  { %v295_v19 = vmul.f32 %v1951_v13, %v290_v16 }
 0x1eb   :  { %v284_v20 = vsub.f32 1.5, %v283_v18 }
 0x1ec   :  { %v300_v21 = vadd.f32 %v1952_v17, %v295_v19 }
 0x1ed   :  { %v285_v22 = vmul.f32 %v1975_v10, %v284_v20 }
 0x1ee   :  { %1826 = vmatmul.msk.f32.vlgmr.msra.gmra.mxu2 %vm239_vm4, %v300_v21 }
 0x1ef   :  { %v289_v23 = vsel %vm288_vm12, %v1975_v10, %v285_v22 }
 0x1f0   :  { %v291_v24 = vmul.f32 %v289_v23, %v257_v56 }
 0x1f2   :  { %v296_v25 = vmul.f32 %v1951_v13, %v291_v24 }
 0x1f4   :  { %v301_v26 = vadd.f32 %v1952_v17, %v296_v25 }
 0x1f6   :  { %1827 = vmatmul.msk.f32.gmra.mxu2 %vm239_vm4, %v301_v26 }
 0x271   :  { %v333_v28 = vpop.f32.mrf.mxu2 }
 0x272   :  { %v2379_v29 = vadd.f32 %v1953_v27, %v333_v28 }
 0x274   :  { %449 = vrot.lane.b32.xlu0 %v2379_v29, %s2127_s0  ;;  %v339_v30 = vmul.f32 0.35355338, %v2379_v29 }
 0x276   :  { %445 = vrot.lane.b32.xlu1 %v339_v30, %s2128_s5 }
 0x279   :  { %v336_v31 = vpop.f32.mrf.mxu2 }
 0x27a   :  { %v2385_v32 = vadd.f32 %v1953_v27, %v336_v31 }
 0x27c   :  { %669 = vrot.lane.b32.xlu0 %v2385_v32, %s2129_s9  ;;  %345 = vrot.lane.b32.xlu2 %v2385_v32, %s2130_s13  ;;  %v340_v33 = vmul.f32 0.35355338, %v2385_v32 }
 0x27e   :  { %667 = vrot.lane.b32.xlu1 %v2379_v29, %s2129_s9 }
 0x284   :  { %343 = vrot.lane.b32.xlu2 %v2379_v29, %s2130_s13 }
 0x286   :  { %663 = vrot.lane.b32.xlu1 %v339_v30, %s2131_s17 }
 0x28c   :  { %451 = vrot.lane.b32.xlu2 %v2385_v32, %s2127_s0 }
 0x294   :  { %447 = vrot.lane.b32.xlu2 %v340_v33, %s2128_s5 }
 0x2d6   :  { %v346_v34 = vpop.permute.xlu2 %345 }
 0x2d7   :  { %1828 = vmatpush.xpose.msk.msrb.mxu2 %vm347_vm13, %v346_v34  ;;  %1896 = vmatpush.xpose.msk.msra.mxu3 %vm347_vm13, %v346_v34 }
 0x2de   :  { %v344_v35 = vpop.permute.xlu2 %343 }
 0x2df   :  { %1829 = vmatpush.xpose.msk.msrb.mxu2 %vm347_vm13, %v344_v35  ;;  %1897 = vmatpush.xpose.msk.msra.mxu3 %vm347_vm13, %v344_v35 }
 0x2e2   :  { %1830 = vmatmul.msk.f32.vlgmr.msrb.gmra.mxu2 %vm347_vm13, %v339_v30  ;;  %1831 = vmatmul.msk.f32.vlgmr.msra.gmra.mxu3 %vm347_vm13, %v340_v33 }
 0x2e6   :  { %v452_v36 = vpop.permute.xlu2 %451  ;;  %v450_v37 = vpop.permute.xlu0 %449 }
 0x2e7   :  { %1835 = vmatpush.xpose.msk.msra.mxu2 %vm347_vm13, %v452_v36 }
 0x2e8   :  { %v446_v39 = vpop.permute.xlu1 %445 }
 0x2eb   :  { %1836 = vmatpush.xpose.msk.msra.mxu2 %vm347_vm13, %v450_v37 }
 0x2ee   :  { %1837 = vmatmul.msk.f32.vlgmr.msra.gmra.mxu2 %vm347_vm13, %v446_v39  ;;  %v670_v41 = vpop.permute.xlu0 %669  ;;  %v448_v43 = vpop.permute.xlu2 %447 }
 0x2ef   :  { %1849 = vmatpush.xpose.msk.msrb.mxu2 %vm347_vm13, %v670_v41 }
 0x2f0   :  { %v668_v42 = vpop.permute.xlu1 %667 }
 0x2f3   :  { %1850 = vmatpush.xpose.msk.msrb.mxu2 %vm347_vm13, %v668_v42 }
 0x2f6   :  { %1838 = vmatmul.msk.f32.gmra.mxu2 %vm347_vm13, %v448_v43 }
 0x2f8   :  { %v664_v44 = vpop.permute.xlu1 %663 }
 0x2fe   :  { %1851 = vmatmul.msk.f32.vlgmr.msrb.gmra.mxu2 %vm347_vm13, %v664_v44 }
 0x365   :  { %v375_v47 = vpop.f32.mrf.mxu2  ;;  %v378_v49 = vpop.f32.mrf.mxu3 }
 0x366   :  { %v376_v50 = vadd.f32 %v375_v47, %v2414_v45  ;;  %v379_v51 = vadd.f32 %v378_v49, %v2417_v46 }
 0x368   :  { %v382_v52 = vsel %vm381_vm14, %v376_v50, -inf  ;;  %v386_v53 = vsel %vm385_vm15, %v379_v51, -inf }
 0x369   :  { %383 = vmax.xlane.f32.xlu0 %v382_v52  ;;  %387 = vmax.xlane.f32.xlu1 %v386_v53 }
 0x371   :  { %v478_v54 = vpop.f32.mrf.mxu2 }
 0x372   :  { %v479_v11 = vadd.f32 %v478_v54, %v2414_v45 }
 0x374   :  { %v484_v12 = vsel %vm381_vm14, %v479_v11, -inf }
 0x379   :  { %v481_v55 = vpop.f32.mrf.mxu2 }
 0x37a   :  { %v2442_v5 = vadd.f32 %v481_v55, %v2417_v46 }
 0x37c   :  { %v487_v7 = vsel %vm385_vm15, %v2442_v5, -inf }
 0x37d   :  { %407 = vrot.lane.b32.xlu0 %v2385_v32, %s2132_s21 }
 0x381   :  { %v696_v56 = vpop.f32.mrf.mxu2 }
 0x382   :  { %405 = vrot.lane.b32.xlu1 %v2379_v29, %s2132_s21  ;;  %v2433_v57 = vadd.f32 %v696_v56, %v2414_v45 }
 0x384   :  { %v702_v58 = vsel %vm381_vm14, %v2433_v57, -inf }
 0x38a   :  { %560 = vrot.lane.b32.xlu1 %v2385_v32, %s2133_s29 }
 0x392   :  { %665 = vrot.lane.b32.xlu1 %v340_v33, %s2131_s17 }
 0x39a   :  { %554 = vrot.lane.b32.xlu1 %v339_v30, %s2134_s3 }
 0x3a2   :  { %556 = vrot.lane.b32.xlu1 %v340_v33, %s2134_s3 }
 0x3cc   :  { %703 = vmax.xlane.f32.xlu1 %v702_v58 }
 0x3dc   :  { %v388_v59 = vpop.xlane.xlu1 %387  ;;  %v384_v60 = vpop.xlane.xlu0 %383 }
 0x3dd   :  { %v390_v61 = vsub.f32 %v379_v51, %v388_v59  ;;  %v389_v62 = vsub.f32 %v376_v50, %v384_v60 }
 0x3df   :  { %v393_v63 = vmul.f32 1.442695, %v390_v61  ;;  %v391_v0 = vmul.f32 1.442695, %v389_v62 }
 0x3e1   :  { %1976 = vpow2.f32 %v393_v63 }
 0x3e2   :  { %1978 = vpow2.f32 %v391_v0 }
 0x3e5   :  { %506 = vrot.lane.b32.xlu1 %v2379_v29, %s2135_s8 }
 0x3e7   :  { %v1977_v1 = vpop.eup %1976 }
 0x3e8   :  { %v1979_v2 = vpop.eup %1978  ;;  %v398_v3 = vsel %vm385_vm15, %v1977_v1, 0.0 }
 0x3e9   :  { %399 = vadd.xlane.f32.xlu0 %v398_v3  ;;  %v395_v4 = vsel %vm381_vm14, %v1979_v2, 0.0 }
 0x3ea   :  { %396 = vadd.xlane.f32.xlu2 %v395_v4 }
 0x3ed   :  { %617 = vrot.lane.b32.xlu1 %v2385_v32, %s2136_s14 }
 0x3ef   :  { %v408_v6 = vpop.permute.xlu0 %407 }
 0x3f0   :  { %1832 = vmatpush.msk.msrb.mxu1 %vm416_vm0, %v408_v6 }
 0x3f1   :  { %488 = vmax.xlane.f32.xlu0 %v487_v7 }
 0x3f4   :  { %v406_v8 = vpop.permute.xlu1 %405 }
 0x3f5   :  { %434 = vmatpush.msrb.mxu1 %v406_v8 }
 0x3fc   :  { %v561_v9 = vpop.permute.xlu1 %560 }
 0x3fd   :  { %1842 = vmatpush.xpose.msk.msrb.mxu0 %vm347_vm13, %v561_v9  ;;  %1898 = vmatpush.xpose.msk.msra.mxu1 %vm347_vm13, %v561_v9 }
 0x402   :  { %558 = vrot.lane.b32.xlu2 %v2379_v29, %s2133_s29 }
 0x404   :  { %v666_v10 = vpop.permute.xlu1 %665 }
 0x405   :  { %1852 = vmatmul.msk.f32.gmra.mxu2 %vm347_vm13, %v666_v10 }
 0x40c   :  { %v555_v13 = vpop.permute.xlu1 %554 }
 0x414   :  { %v557_v14 = vpop.permute.xlu1 %556 }
 0x42b   :  { %485 = vmax.xlane.f32.xlu2 %v484_v12 }
 0x43f   :  { %v704_v15 = vpop.xlane.xlu1 %703 }
 0x440   :  { %v708_v52 = vsub.f32 %v2433_v57, %v704_v15 }
 0x442   :  { %v710_v54 = vmul.f32 1.442695, %v708_v52 }
 0x443   :  { %508 = vrot.lane.b32.xlu2 %v2385_v32, %s2135_s8 }
 0x44b   :  { %726 = vrot.lane.b32.xlu2 %v2385_v32, %s2137_s15 }
 0x453   :  { %724 = vrot.lane.b32.xlu2 %v2379_v29, %s2137_s15 }
 0x457   :  { %v507_v16 = vpop.permute.xlu1 %506 }
 0x45b   :  { %615 = vrot.lane.b32.xlu2 %v2379_v29, %s2136_s14 }
 0x45c   :  { %v400_v18 = vpop.xlane.xlu0 %399 }
 0x45d   :  { %v397_v17 = vpop.xlane.xlu2 %396 }
 0x45e   :  { %1980 = vrcp.f32 %v397_v17 }
 0x45f   :  { %1982 = vrcp.f32 %v400_v18  ;;  %v618_v22 = vpop.permute.xlu1 %617 }
 0x464   :  { %v1981_v19 = vpop.eup %1980  ;;  %v489_v43 = vpop.xlane.xlu0 %488 }
 0x465   :  { %v559_v20 = vpop.permute.xlu2 %558  ;;  %v403_v21 = vmul.f32 %v1981_v19, %v1979_v2  ;;  %v1983_v23 = vpop.eup %1982  ;;  %v491_v47 = vsub.f32 %v2442_v5, %v489_v43 }
 0x466   :  { %1843 = vmatpush.xpose.msk.msrb.mxu0 %vm347_vm13, %v559_v20  ;;  %1899 = vmatpush.xpose.msk.msra.mxu1 %vm347_vm13, %v559_v20  ;;  %v404_v24 = vmul.f32 %v1983_v23, %v1977_v1 }
 0x467   :  { %1833 = vmatmul.msk.f32.vlgmr.msrb.gmra.mxu1 %vm381_vm14, %v403_v21  ;;  %v494_v50 = vmul.f32 1.442695, %v491_v47 }
 0x469   :  { %1844 = vmatmul.msk.f32.vlgmr.msrb.gmra.mxu0 %vm347_vm13, %v555_v13 }
 0x46a   :  { %1846 = vmatpush.msk.msrb.mxu1 %vm416_vm0, %v618_v22 }
 0x46f   :  { %1834 = vmatmul.msk.f32.gmra.mxu1 %vm381_vm14, %v404_v24 }
 0x477   :  { %1845 = vmatmul.msk.f32.vlgmr.msra.gmra.mxu1 %vm347_vm13, %v557_v14 }
 0x488   :  { %v699_v34 = vpop.f32.mrf.mxu2 }
 0x489   :  { %v700_v36 = vadd.f32 %v699_v34, %v2417_v46 }
 0x48b   :  { %v705_v39 = vsel %vm385_vm15, %v700_v36, -inf }
 0x49e   :  { %v486_v25 = vpop.xlane.xlu2 %485 }
 0x49f   :  { %v490_v37 = vsub.f32 %v479_v11, %v486_v25 }
 0x4a1   :  { %v492_v41 = vmul.f32 1.442695, %v490_v37  ;;  %v776_v37 = vld [vmem:[%s2200_s19 + $0x10] sm:$0xff] }
 0x4a3   :  { %1984 = vpow2.f32 %v492_v41  ;;  %v774_v41 = vld [vmem:[%s2200_s19] sm:$0xff] }
 0x4a4   :  { %1986 = vpow2.f32 %v494_v50 }
 0x4a5   :  { %1988 = vpow2.f32 %v710_v54 }
 0x4a6   :  { %v509_v26 = vpop.permute.xlu2 %508 }
 0x4a7   :  { %1839 = vmatpush.msk.msrb.mxu3 %vm416_vm0, %v509_v26 }
 0x4a9   :  { %534 = vmatpush.msrb.mxu3 %v507_v16  ;;  %v1985_v51 = vpop.eup %1984 }
 0x4aa   :  { %v496_v53 = vsel %vm381_vm14, %v1985_v51, 0.0  ;;  %v1987_v55 = vpop.eup %1986 }
 0x4ab   :  { %v499_v56 = vsel %vm385_vm15, %v1987_v55, 0.0  ;;  %v1989_v58 = vpop.eup %1988 }
 0x4ac   :  { %v714_v59 = vsel %vm381_vm14, %v1989_v58, 0.0 }
 0x4ae   :  { %v727_v27 = vpop.permute.xlu2 %726 }
 0x4af   :  { %1853 = vmatpush.msk.msra.mxu3 %vm416_vm0, %v727_v27 }
 0x4b6   :  { %v725_v28 = vpop.permute.xlu2 %724 }
 0x4b7   :  { %752 = vmatpush.msra.mxu3 %v725_v28 }
 0x4be   :  { %v616_v29 = vpop.permute.xlu2 %615 }
 0x4bf   :  { %643 = vmatpush.msrb.mxu1 %v616_v29 }
 0x4e4   :  { %v436_v30 = vpop.f32.mrf.mxu1 }
 0x4e5   :  { %442 = vst.msk [vmem:[#allocation3] sm:$0xff] %vm347_vm13, %v436_v30 }
 0x4e6   :  { %v587_v31 = vpop.f32.mrf.mxu0 }
 0x4e7   :  { %v588_v32 = vadd.f32 %v587_v31, %v2414_v45 }
 0x4e9   :  { %v593_v33 = vsel %vm381_vm14, %v588_v32, -inf }
 0x4ea   :  { %594 = vmax.xlane.f32.xlu0 %v593_v33 }
 0x4ec   :  { %v439_v35 = vpop.f32.mrf.mxu1 }
 0x4ed   :  { %444 = vst.msk [vmem:[#allocation3 + $0x8] sm:$0x3] %vm443_vm1, %v439_v35 }
 0x4f2   :  { %706 = vmax.xlane.f32.xlu0 %v705_v39  ;;  %v775_v39 = vld [vmem:[%s2200_s19 + $0x8] sm:$0xff] }
 0x4f4   :  { %v590_v42 = vpop.f32.mrf.mxu1 }
 0x4f5   :  { %v591_v44 = vadd.f32 %v590_v42, %v2417_v46 }
 0x4f7   :  { %v596_v49 = vsel %vm385_vm15, %v591_v44, -inf }
 0x4fa   :  { %597 = vmax.xlane.f32.xlu0 %v596_v49 }
 0x502   :  { %497 = vadd.xlane.f32.xlu0 %v496_v53 }
 0x50a   :  { %500 = vadd.xlane.f32.xlu0 %v499_v56 }
 0x512   :  { %715 = vadd.xlane.f32.xlu0 %v714_v59 }
 0x55d   :  { %v595_v60 = vpop.xlane.xlu0 %594 }
 0x55e   :  { %v599_v61 = vsub.f32 %v588_v32, %v595_v60 }
 0x560   :  { %v601_v62 = vmul.f32 1.442695, %v599_v61 }
 0x562   :  { %1990 = vpow2.f32 %v601_v62 }
 0x565   :  { %v707_v63 = vpop.xlane.xlu0 %706 }
 0x566   :  { %v709_v57 = vsub.f32 %v700_v36, %v707_v63  ;;  %v777_v36 = vld [vmem:[%s2200_s19 + $0x18] sm:$0xff]  ;;  %s2814_s19 = sld [smem:[#allocation7_spill]] }
 0x567   :  { %800 = vmatpush.msra.mxu0 %v777_v36 }
 0x568   :  { %v1991_v0 = vpop.eup %1990  ;;  %v712_v1 = vmul.f32 1.442695, %v709_v57 }
 0x569   :  { %v605_v2 = vsel %vm381_vm14, %v1991_v0, 0.0  ;;  %801 = vmatpush.msra.mxu0 %v776_v37 }
 0x56a   :  { %1992 = vpow2.f32 %v712_v1  ;;  %606 = vadd.xlane.f32.xlu0 %v605_v2 }
 0x56b   :  { %802 = vmatpush.msra.mxu0 %v775_v39 }
 0x56d   :  { %v598_v3 = vpop.xlane.xlu0 %597  ;;  %803 = vmatpush.msra.mxu0 %v774_v41 }
 0x56e   :  { %v600_v4 = vsub.f32 %v591_v44, %v598_v3 }
 0x570   :  { %v1993_v5 = vpop.eup %1992  ;;  %v603_v6 = vmul.f32 1.442695, %v600_v4  ;;  %v872_v4 = vld [vmem:[%s2220_s12 + $0x18] sm:$0xff] }
 0x571   :  { %v717_v7 = vsel %vm385_vm15, %v1993_v5, 0.0  ;;  %895 = vmatpush.msra.mxu1 %v872_v4 }
 0x572   :  { %1994 = vpow2.f32 %v603_v6  ;;  %718 = vadd.xlane.f32.xlu0 %v717_v7  ;;  %v870_v6 = vld [vmem:[%s2220_s12 + $0x8] sm:$0xff]  ;;  %v869_v7 = vld [vmem:[%s2220_s12] sm:$0xff] }
 0x575   :  { %v498_v8 = vpop.xlane.xlu0 %497 }
 0x576   :  { %1996 = vrcp.f32 %v498_v8 }
 0x578   :  { %v1995_v9 = vpop.eup %1994 }
 0x579   :  { %v608_v10 = vsel %vm385_vm15, %v1995_v9, 0.0 }
 0x57a   :  { %609 = vadd.xlane.f32.xlu0 %v608_v10 }
 0x57c   :  { %v1997_v11 = vpop.eup %1996 }
 0x57d   :  { %v501_v12 = vpop.xlane.xlu0 %500  ;;  %v504_v13 = vmul.f32 %v1997_v11, %v1985_v51  ;;  %v1954_v51 = vld [vmem:[%s2205_s24] ss:$0 sm:$0xff]  ;;  %v939_v11 = vld [vmem:[%s2230_s27 + $0x78] sm:$0xff]  ;;  %s2815_s24 = sld [smem:[#allocation8_spill]] }
 0x57e   :  { %1998 = vrcp.f32 %v501_v12  ;;  %v938_v12 = vld [vmem:[%s2230_s27 + $0x70] sm:$0xff]  ;;  %944 = vmatpush.msra.mxu2 %v939_v11 }
 0x57f   :  { %1840 = vmatmul.msk.f32.vlgmr.msrb.gmra.mxu3 %vm381_vm14, %v504_v13 }
 0x580   :  { %945 = vmatpush.msra.mxu2 %v938_v12 }
 0x584   :  { %v1999_v14 = vpop.eup %1998 }
 0x585   :  { %v716_v15 = vpop.xlane.xlu0 %715  ;;  %v505_v16 = vmul.f32 %v1999_v14, %v1987_v55 }
 0x586   :  { %2000 = vrcp.f32 %v716_v15  ;;  %v937_v15 = vld [vmem:[%s2230_s27 + $0x68] sm:$0xff] }
 0x587   :  { %1841 = vmatmul.msk.f32.gmra.mxu3 %vm381_vm14, %v505_v16  ;;  %946 = vmatpush.msra.mxu2 %v937_v15 }
 0x58c   :  { %v2001_v17 = vpop.eup %2000 }
 0x58d   :  { %v722_v18 = vmul.f32 %v2001_v17, %v1989_v58 }
 0x58f   :  { %1854 = vmatmul.msk.f32.vlgmr.msra.gmra.mxu3 %vm381_vm14, %v722_v18 }
 0x5dd   :  { %v607_v19 = vpop.xlane.xlu0 %606 }
 0x5de   :  { %2002 = vrcp.f32 %v607_v19  ;;  %v936_v19 = vld [vmem:[%s2230_s27 + $0x60] sm:$0xff] }
 0x5df   :  { %947 = vmatpush.msra.mxu2 %v936_v19 }
 0x5e4   :  { %v2003_v20 = vpop.eup %2002 }
 0x5e5   :  { %v613_v21 = vmul.f32 %v2003_v20, %v1991_v0  ;;  %v719_v22 = vpop.xlane.xlu0 %718 }
 0x5e6   :  { %2004 = vrcp.f32 %v719_v22 }
 0x5e7   :  { %1847 = vmatmul.msk.f32.vlgmr.msrb.gmra.mxu1 %vm381_vm14, %v613_v21 }
 0x5ec   :  { %v2005_v23 = vpop.eup %2004 }
 0x5ed   :  { %v610_v24 = vpop.xlane.xlu0 %609  ;;  %v723_v25 = vmul.f32 %v2005_v23, %v1993_v5  ;;  %v871_v5 = vld [vmem:[%s2220_s12 + $0x10] sm:$0xff]  ;;  %s2816_s12 = sld [smem:[#allocation9_spill]] }
 0x5ee   :  { %2006 = vrcp.f32 %v610_v24  ;;  %896 = vmatpush.msra.mxu1 %v871_v5  ;;  %v1955_v24 = vld [vmem:[%s2814_s19] ss:$0 sm:$0xff] }
 0x5ef   :  { %1855 = vmatmul.msk.f32.gmra.mxu3 %vm381_vm14, %v723_v25 }
 0x5f0   :  { %897 = vmatpush.msra.mxu1 %v870_v6 }
 0x5f2   :  { %898 = vmatpush.msra.mxu1 %v869_v7 }
 0x5f4   :  { %v2007_v26 = vpop.eup %2006 }
 0x5f5   :  { %v614_v27 = vmul.f32 %v2007_v26, %v1995_v9 }
 0x5f7   :  { %1848 = vmatmul.msk.f32.gmra.mxu1 %vm381_vm14, %v614_v27  ;;  %v1956_v27 = vld [vmem:[%s2815_s24] ss:$0 sm:$0xff] }
 0x602   :  { %v536_v28 = vpop.f32.mrf.mxu3 }
 0x603   :  { %544 = vrot.lane.b32.xlu1 %v536_v28, %s2138_s16 }
 0x60a   :  { %v539_v29 = vpop.f32.mrf.mxu3 }
 0x60b   :  { %546 = vrot.lane.b32.xlu1 %v539_v29, %s2138_s16 }
 0x612   :  { %v754_v30 = vpop.f32.mrf.mxu3 }
 0x613   :  { %762 = vrot.lane.b32.xlu2 %v754_v30, %s2139_s18 }
 0x664   :  { %v645_v31 = vpop.f32.mrf.mxu1 }
 0x665   :  { %653 = vrot.lane.b32.xlu0 %v645_v31, %s2140_s22 }
 0x66d   :  { %v763_v42 = vpop.permute.xlu2 %762 }
 0x672   :  { %v757_v32 = vpop.f32.mrf.mxu3 }
 0x673   :  { %764 = vrot.lane.b32.xlu1 %v757_v32, %s2139_s18 }
 0x674   :  { %v648_v33 = vpop.f32.mrf.mxu1 }
 0x675   :  { %v545_v34 = vpop.permute.xlu1 %544  ;;  %655 = vrot.lane.b32.xlu2 %v648_v33, %s2140_s22 }
 0x676   :  { %551 = vst.msk [vmem:[#allocation3] sm:$0xff] %vm550_vm2, %v545_v34 }
 0x67d   :  { %v547_v35 = vpop.permute.xlu1 %546 }
 0x67e   :  { %553 = vst.msk [vmem:[#allocation3 + $0x8] sm:$0x3] %vm552_vm3, %v547_v35 }
 0x6cf   :  { %v656_v43 = vpop.permute.xlu2 %655 }
 0x6d0   :  { %662 = vst.msk [vmem:[#allocation3 + $0x8] sm:$0x3] %vm2796_vm6, %v656_v43  ;;  %v934_v43 = vld [vmem:[%s2230_s27 + $0x50] sm:$0xff] }
 0x6d7   :  { %v654_v44 = vpop.permute.xlu0 %653 }
 0x6d8   :  { %660 = vst.msk [vmem:[#allocation3] sm:$0xff] %vm659_vm7, %v654_v44  ;;  %v933_v44 = vld [vmem:[%s2230_s27 + $0x48] sm:$0xff] }
 0x6d9   :  { %769 = vst.msk [vmem:[#allocation3] sm:$0xff] %vm768_vm8, %v763_v42  ;;  %v935_v42 = vld [vmem:[%s2230_s27 + $0x58] sm:$0xff] }
 0x6da   :  { %948 = vmatpush.msra.mxu2 %v935_v42 }
 0x6dc   :  { %949 = vmatpush.msra.mxu2 %v934_v43 }
 0x6de   :  { %950 = vmatpush.msra.mxu2 %v933_v44 }
 0x6e0   :  { %v772_v47 = vld [vmem:[#allocation3] sm:$0xff] }
 0x6e1   :  { %1856 = vmatmul.msk.f32.vlgmr.msra.gmra.mxu0 %vm239_vm4, %v772_v47  ;;  %v932_v47 = vld [vmem:[%s2230_s27 + $0x40] sm:$0xff] }
 0x6e2   :  { %951 = vmatpush.msra.mxu2 %v932_v47 }
 0x6e5   :  { %v765_v49 = vpop.permute.xlu1 %764 }
 0x6e6   :  { %771 = vst.msk [vmem:[#allocation3 + $0x8] sm:$0x3] %vm2794_vm9, %v765_v49  ;;  %v931_v49 = vld [vmem:[%s2230_s27 + $0x38] sm:$0xff] }
 0x6e7   :  { %952 = vmatpush.msra.mxu2 %v931_v49 }
 0x6ed   :  { %v773_v50 = vld [vmem:[#allocation3 + $0x8] sm:$0x3] }
 0x6ee   :  { %1857 = vmatmul.msk.f32.gmra.mxu0 %vm239_vm4, %v773_v50  ;;  %v930_v50 = vld [vmem:[%s2230_s27 + $0x30] sm:$0xff] }
 0x6ef   :  { %953 = vmatpush.msra.mxu2 %v930_v50 }
 0x75e   :  { %v805_v52 = vpop.f32.mrf.mxu0 }
 0x75f   :  { %v806_v53 = vadd.f32 %v1954_v51, %v805_v52  ;;  %v928_v52 = vld [vmem:[%s2230_s27 + $0x20] sm:$0xff] }
 0x761   :  { %v2515_v54 = vadd.f32 %v806_v53, %v2352_v38  ;;  %v927_v53 = vld [vmem:[%s2230_s27 + $0x18] sm:$0xff] }
 0x763   :  { %v815_v55 = vsel %vm239_vm4, %v2515_v54, 0.0 }
 0x764   :  { %816 = vadd.xlane.f32.xlu0 %v815_v55  ;;  %v926_v55 = vld [vmem:[%s2230_s27 + $0x10] sm:$0xff] }
 0x76b   :  { %v808_v56 = vpop.f32.mrf.mxu0 }
 0x76c   :  { %v809_v58 = vadd.f32 %v1954_v51, %v808_v56  ;;  %v929_v51 = vld [vmem:[%s2230_s27 + $0x28] sm:$0xff] }
 0x76d   :  { %954 = vmatpush.msra.mxu2 %v929_v51  ;;  %v925_v56 = vld [vmem:[%s2230_s27 + $0x8] sm:$0xff] }
 0x76e   :  { %v2520_v59 = vadd.f32 %v809_v58, %v2356_v40  ;;  %v924_v58 = vld [vmem:[%s2230_s27] sm:$0xff]  ;;  %s2818_s27 = sld [smem:[#allocation13_spill]] }
 0x76f   :  { %955 = vmatpush.msra.mxu2 %v928_v52 }
 0x770   :  { %v818_v60 = vsel %vm2795_vm5, %v2520_v59, 0.0 }
 0x771   :  { %819 = vadd.xlane.f32.xlu2 %v818_v60  ;;  %956 = vmatpush.msra.mxu2 %v927_v53  ;;  %v1957_v60 = vld [vmem:[%s2816_s12] ss:$0 sm:$0xff] }
 0x773   :  { %957 = vmatpush.msra.mxu2 %v926_v55  ;;  %v1959_v55 = vld [vmem:[%s2819_s26] ss:$0 sm:$0xff] }
 0x775   :  { %958 = vmatpush.msra.mxu2 %v925_v56 }
 0x777   :  { %959 = vmatpush.msra.mxu2 %v924_v58 }
 0x7d7   :  { %v817_v61 = vpop.xlane.xlu0 %816 }
 0x7d8   :  { %v821_v38 = vmul.f32 %v817_v61, %v2360_v48 }
 0x7da   :  { %v823_v62 = vsub.f32 %v2515_v54, %v821_v38 }
 0x7dc   :  { %v825_v63 = vmul.f32 %v823_v62, %v823_v62 }
 0x7de   :  { %v827_v57 = vsel %vm239_vm4, %v825_v63, 0.0 }
 0x7df   :  { %828 = vadd.xlane.f32.xlu1 %v827_v57 }
 0x7e4   :  { %v820_v0 = vpop.xlane.xlu2 %819 }
 0x7e5   :  { %v822_v40 = vmul.f32 %v820_v0, %v2360_v48 }
 0x7e7   :  { %v824_v1 = vsub.f32 %v2520_v59, %v822_v40 }
 0x7e9   :  { %v826_v2 = vmul.f32 %v824_v1, %v824_v1 }
 0x7eb   :  { %v830_v3 = vsel %vm2795_vm5, %v826_v2, 0.0 }
 0x7ec   :  { %831 = vadd.xlane.f32.xlu2 %v830_v3 }
 0x852   :  { %v829_v8 = vpop.xlane.xlu1 %828 }
 0x853   :  { %v833_v9 = vmul.f32 %v829_v8, %v2360_v48 }
 0x855   :  { %v835_v10 = vadd.f32 1e-06, %v833_v9 }
 0x857   :  { %2008 = vrsqrt.f32 %v835_v10  ;;  %vm843_vm11 = vweird.f32 %v835_v10 }
 0x85d   :  { %v2009_v13 = vpop.eup %2008 }
 0x85e   :  { %v838_v14 = vmul.f32 %v2009_v13, %v835_v10  ;;  %vm844_vm10 = vweird.f32 %v2009_v13 }
 0x85f   :  { %v832_v16 = vpop.xlane.xlu2 %831  ;;  %vm845_vm12 = vmor %vm843_vm11, %vm844_vm10 }
 0x860   :  { %v839_v17 = vmul.f32 %v2009_v13, %v838_v14  ;;  %v834_v18 = vmul.f32 %v832_v16, %v2360_v48  ;;  %v1958_v16 = vld [vmem:[%s2817_s23] ss:$0 sm:$0xff] }
 0x862   :  { %v840_v20 = vmul.f32 0.5, %v839_v17  ;;  %v836_v21 = vadd.f32 1e-06, %v834_v18 }
 0x864   :  { %v841_v22 = vsub.f32 1.5, %v840_v20  ;;  %2010 = vrsqrt.f32 %v836_v21  ;;  %vm853_vm10 = vweird.f32 %v836_v21 }
 0x866   :  { %v842_v23 = vmul.f32 %v2009_v13, %v841_v22 }
 0x868   :  { %v846_v25 = vsel %vm845_vm12, %v2009_v13, %v842_v23 }
 0x869   :  { %v857_v26 = vmul.f32 %v846_v25, %v823_v62 }
 0x86a   :  { %v2011_v28 = vpop.eup %2010 }
 0x86b   :  { %v862_v29 = vmul.f32 %v1955_v24, %v857_v26  ;;  %v848_v30 = vmul.f32 %v2011_v28, %v836_v21  ;;  %vm854_vm9 = vweird.f32 %v2011_v28 }
 0x86c   :  { %vm855_vm11 = vmor %vm853_vm10, %vm854_vm9 }
 0x86d   :  { %v849_v31 = vmul.f32 %v2011_v28, %v848_v30  ;;  %v867_v32 = vadd.f32 %v1956_v27, %v862_v29 }
 0x86f   :  { %v850_v33 = vmul.f32 0.5, %v849_v31  ;;  %1858 = vmatmul.msk.f32.vlgmr.msra.gmra.mxu1 %vm239_vm4, %v867_v32 }
 0x871   :  { %v851_v34 = vsub.f32 1.5, %v850_v33  ;;  %v1028_v33 = vld [vmem:[%s2818_s27 + $0x18] sm:$0xff] }
 0x872   :  { %1051 = vmatpush.msrb.mxu3 %v1028_v33 }
 0x873   :  { %v852_v35 = vmul.f32 %v2011_v28, %v851_v34  ;;  %v1027_v34 = vld [vmem:[%s2818_s27 + $0x10] sm:$0xff] }
 0x874   :  { %1052 = vmatpush.msrb.mxu3 %v1027_v34 }
 0x875   :  { %v856_v36 = vsel %vm855_vm11, %v2011_v28, %v852_v35  ;;  %v1026_v35 = vld [vmem:[%s2818_s27 + $0x8] sm:$0xff] }
 0x876   :  { %v858_v37 = vmul.f32 %v856_v36, %v824_v1  ;;  %1053 = vmatpush.msrb.mxu3 %v1026_v35  ;;  %v1025_v36 = vld [vmem:[%s2818_s27] sm:$0xff] }
 0x878   :  { %v863_v39 = vmul.f32 %v1955_v24, %v858_v37  ;;  %1054 = vmatpush.msrb.mxu3 %v1025_v36 }
 0x87a   :  { %v868_v41 = vadd.f32 %v1956_v27, %v863_v39 }
 0x87c   :  { %1859 = vmatmul.msk.f32.gmra.mxu1 %vm239_vm4, %v868_v41 }
 0x8ec   :  { %v900_v61 = vpop.f32.mrf.mxu1 }
 0x8ed   :  { %v901_v38 = vadd.f32 %v1957_v60, %v900_v61 }
 0x8ef   :  { %v908_v62 = vmul.f32 0.044715, %v901_v38  ;;  %v906_v6 = vmul.f32 0.5, %v901_v38 }
 0x8f1   :  { %v910_v63 = vmul.f32 %v908_v62, %v901_v38 }
 0x8f3   :  { %v912_v57 = vmul.f32 %v910_v63, %v901_v38 }
 0x8f5   :  { %v914_v0 = vadd.f32 %v912_v57, %v901_v38 }
 0x8f7   :  { %v916_v40 = vmul.f32 0.7978846, %v914_v0 }
 0x8f9   :  { %v903_v1 = vpop.f32.mrf.mxu1  ;;  %2012 = vtanh.f32 %v916_v40 }
 0x8fa   :  { %v904_v2 = vadd.f32 %v1957_v60, %v903_v1  ;;  %v1960_v60 = vld [vmem:[%s2820_s28] ss:$0 sm:$0xff] }
 0x8fc   :  { %v909_v3 = vmul.f32 0.044715, %v904_v2  ;;  %v907_v13 = vmul.f32 0.5, %v904_v2 }
 0x8fe   :  { %v911_v4 = vmul.f32 %v909_v3, %v904_v2 }
 0x8ff   :  { %v2013_v5 = vpop.eup %2012 }
 0x900   :  { %v920_v7 = vadd.f32 1.0, %v2013_v5  ;;  %v913_v8 = vmul.f32 %v911_v4, %v904_v2 }
 0x902   :  { %v922_v9 = vmul.f32 %v920_v7, %v906_v6  ;;  %v915_v10 = vadd.f32 %v913_v8, %v904_v2  ;;  %v1961_v6 = vld [vmem:[%s2821_s1] ss:$0 sm:$0xff] }
 0x904   :  { %960 = vmatmul.f32.vlgmr.msra.gmra.mxu2 %v922_v9  ;;  %v917_v11 = vmul.f32 0.7978846, %v915_v10 }
 0x906   :  { %2014 = vtanh.f32 %v917_v11 }
 0x90c   :  { %v2015_v12 = vpop.eup %2014 }
 0x90d   :  { %v921_v14 = vadd.f32 1.0, %v2015_v12 }
 0x90f   :  { %v923_v15 = vmul.f32 %v921_v14, %v907_v13 }
 0x911   :  { %963 = vmatmul.f32.gmra.mxu2 %v923_v15 }
 0x987   :  { %v961_v17 = vpop.f32.mrf.mxu2 }
 0x988   :  { %v962_v18 = vadd.f32 %v1958_v16, %v961_v17 }
 0x98a   :  { %v2559_v19 = vadd.f32 %v962_v18, %v2515_v54 }
 0x98c   :  { %v971_v20 = vsel %vm239_vm4, %v2559_v19, 0.0 }
 0x98d   :  { %972 = vadd.xlane.f32.xlu0 %v971_v20 }
 0x994   :  { %v964_v21 = vpop.f32.mrf.mxu2 }
 0x995   :  { %v965_v22 = vadd.f32 %v1958_v16, %v964_v21 }
 0x997   :  { %v2564_v23 = vadd.f32 %v965_v22, %v2520_v59 }
 0x999   :  { %v974_v24 = vsel %vm2795_vm5, %v2564_v23, 0.0 }
 0x99a   :  { %975 = vadd.xlane.f32.xlu1 %v974_v24 }
 0xa00   :  { %v973_v25 = vpop.xlane.xlu0 %972 }
 0xa01   :  { %v977_v54 = vmul.f32 %v973_v25, %v2360_v48 }
 0xa03   :  { %v979_v26 = vsub.f32 %v2559_v19, %v977_v54 }
 0xa05   :  { %v981_v27 = vmul.f32 %v979_v26, %v979_v26 }
 0xa07   :  { %v983_v28 = vsel %vm239_vm4, %v981_v27, 0.0 }
 0xa08   :  { %984 = vadd.xlane.f32.xlu2 %v983_v28 }
 0xa0d   :  { %v976_v29 = vpop.xlane.xlu1 %975 }
 0xa0e   :  { %v978_v59 = vmul.f32 %v976_v29, %v2360_v48 }
 0xa10   :  { %v980_v30 = vsub.f32 %v2564_v23, %v978_v59 }
 0xa12   :  { %v982_v31 = vmul.f32 %v980_v30, %v980_v30 }
 0xa14   :  { %v986_v32 = vsel %vm2795_vm5, %v982_v31, 0.0 }
 0xa15   :  { %987 = vadd.xlane.f32.xlu0 %v986_v32 }
 0xa7b   :  { %v985_v37 = vpop.xlane.xlu2 %984 }
 0xa7c   :  { %v989_v39 = vmul.f32 %v985_v37, %v2360_v48 }
 0xa7e   :  { %v991_v41 = vadd.f32 1e-06, %v989_v39 }
 0xa80   :  { %2016 = vrsqrt.f32 %v991_v41  ;;  %vm999_vm12 = vweird.f32 %v991_v41 }
 0xa86   :  { %v2017_v42 = vpop.eup %2016 }
 0xa87   :  { %v994_v43 = vmul.f32 %v2017_v42, %v991_v41  ;;  %vm1000_vm9 = vweird.f32 %v2017_v42 }
 0xa88   :  { %v988_v44 = vpop.xlane.xlu0 %987  ;;  %vm1001_vm10 = vmor %vm999_vm12, %vm1000_vm9 }
 0xa89   :  { %v995_v47 = vmul.f32 %v2017_v42, %v994_v43  ;;  %v990_v49 = vmul.f32 %v988_v44, %v2360_v48 }
 0xa8b   :  { %v996_v50 = vmul.f32 0.5, %v995_v47  ;;  %v992_v51 = vadd.f32 1e-06, %v990_v49 }
 0xa8d   :  { %v997_v52 = vsub.f32 1.5, %v996_v50  ;;  %2018 = vrsqrt.f32 %v992_v51  ;;  %vm1009_vm5 = vweird.f32 %v992_v51 }
 0xa8f   :  { %v998_v53 = vmul.f32 %v2017_v42, %v997_v52 }
 0xa91   :  { %v1002_v56 = vsel %vm1001_vm10, %v2017_v42, %v998_v53 }
 0xa92   :  { %v1013_v58 = vmul.f32 %v1002_v56, %v979_v26 }
 0xa93   :  { %v2019_v61 = vpop.eup %2018 }
 0xa94   :  { %v1018_v38 = vmul.f32 %v1959_v55, %v1013_v58  ;;  %v1004_v62 = vmul.f32 %v2019_v61, %v992_v51  ;;  %vm1010_vm11 = vweird.f32 %v2019_v61 }
 0xa95   :  { %vm1011_vm6 = vmor %vm1009_vm5, %vm1010_vm11  ;;  %vm2824_vm5 = vcmask 189568  }
 0xa96   :  { %v1005_v63 = vmul.f32 %v2019_v61, %v1004_v62  ;;  %v1023_v57 = vadd.f32 %v1960_v60, %v1018_v38 }
 0xa98   :  { %v1006_v0 = vmul.f32 0.5, %v1005_v63  ;;  %1860 = vmatmul.msk.f32.vlgmr.msrb.gmra.mxu3 %vm239_vm4, %v1023_v57 }
 0xa9a   :  { %v1007_v40 = vsub.f32 1.5, %v1006_v0 }
 0xa9c   :  { %v1008_v1 = vmul.f32 %v2019_v61, %v1007_v40 }
 0xa9e   :  { %v1012_v2 = vsel %vm1011_vm6, %v2019_v61, %v1008_v1 }
 0xa9f   :  { %v1014_v3 = vmul.f32 %v1012_v2, %v980_v30 }
 0xaa1   :  { %v1019_v4 = vmul.f32 %v1959_v55, %v1014_v3 }
 0xaa3   :  { %v1024_v5 = vadd.f32 %v1960_v60, %v1019_v4 }
 0xaa5   :  { %1861 = vmatmul.msk.f32.gmra.mxu3 %vm239_vm4, %v1024_v5 }
 0xb1b   :  { %v1056_v7 = vpop.f32.mrf.mxu3 }
 0xb1c   :  { %v2585_v8 = vadd.f32 %v1961_v6, %v1056_v7 }
 0xb1e   :  { %1066 = vrot.lane.b32.xlu2 %v2585_v8, %s2130_s13  ;;  %v1062_v9 = vmul.f32 0.35355338, %v2585_v8 }
 0xb20   :  { %1163 = vrot.lane.b32.xlu0 %v1062_v9, %s2128_s5 }
 0xb26   :  { %1125 = vrot.lane.b32.xlu2 %v2585_v8, %s2132_s21 }
 0xb28   :  { %v1059_v10 = vpop.f32.mrf.mxu3 }
 0xb29   :  { %v2593_v11 = vadd.f32 %v1961_v6, %v1059_v10 }
 0xb2b   :  { %1068 = vrot.lane.b32.xlu1 %v2593_v11, %s2130_s13  ;;  %v2611_v12 = vmul.f32 0.35355338, %v2593_v11  ;;  %s2836_s13 = sld [smem:[#allocation23_spill]] }
 0xb2e   :  { %1127 = vrot.lane.b32.xlu2 %v2593_v11, %s2132_s21 }
 0xb33   :  { %1167 = vrot.lane.b32.xlu1 %v2585_v8, %s2127_s0 }
 0xb36   :  { %1274 = vrot.lane.b32.xlu2 %v2585_v8, %s2133_s29 }
 0xb3b   :  { %1169 = vrot.lane.b32.xlu1 %v2593_v11, %s2127_s0  ;;  %s2831_s0 = sld [smem:[#allocation21_spill]] }
 0xb3e   :  { %1276 = vrot.lane.b32.xlu2 %v2593_v11, %s2133_s29 }
 0xb43   :  { %1383 = vrot.lane.b32.xlu1 %v2593_v11, %s2129_s9 }
 0xb46   :  { %1377 = vrot.lane.b32.xlu2 %v1062_v9, %s2131_s17 }
 0xb4b   :  { %1165 = vrot.lane.b32.xlu1 %v2611_v12, %s2128_s5  ;;  %s2832_s5 = sld [smem:[#allocation20_spill]] }
 0xb53   :  { %1381 = vrot.lane.b32.xlu1 %v2585_v8, %s2129_s9  ;;  %s2833_s9 = sld [smem:[#allocation22_spill]] }
 0xb5b   :  { %1272 = vrot.lane.b32.xlu1 %v2611_v12, %s2134_s3 }
 0xb78   :  { %v1067_v13 = vpop.permute.xlu2 %1066 }
 0xb80   :  { %v1126_v14 = vpop.permute.xlu2 %1125 }
 0xb88   :  { %v1128_v15 = vpop.permute.xlu2 %1127 }
 0xb89   :  { %1866 = vmatpush.msk.msrb.mxu1 %vm416_vm0, %v1128_v15 }
 0xb8b   :  { %1153 = vmatpush.msrb.mxu1 %v1126_v14 }
 0xb90   :  { %v1275_v16 = vpop.permute.xlu2 %1274 }
 0xb92   :  { %v1164_v22 = vpop.permute.xlu0 %1163 }
 0xb98   :  { %v1277_v17 = vpop.permute.xlu2 %1276 }
 0xb99   :  { %1876 = vmatpush.xpose.msk.msra.mxu1 %vm347_vm13, %v1277_v17 }
 0xb9d   :  { %1877 = vmatpush.xpose.msk.msra.mxu1 %vm347_vm13, %v1275_v16  ;;  %v1069_v18 = vpop.permute.xlu1 %1068 }
 0xb9e   :  { %1862 = vmatpush.xpose.msk.msrb.mxu0 %vm347_vm13, %v1069_v18 }
 0xba0   :  { %v1378_v26 = vpop.permute.xlu2 %1377 }
 0xba2   :  { %1863 = vmatpush.xpose.msk.msrb.mxu0 %vm347_vm13, %v1067_v13 }
 0xba5   :  { %1864 = vmatmul.msk.f32.vlgmr.msrb.gmra.mxu0 %vm347_vm13, %v1062_v9  ;;  %v1168_v20 = vpop.permute.xlu1 %1167 }
 0xbad   :  { %v1170_v21 = vpop.permute.xlu1 %1169  ;;  %1865 = vmatmul.msk.f32.gmra.mxu0 %vm347_vm13, %v2611_v12 }
 0xbae   :  { %1869 = vmatpush.xpose.msk.msra.mxu3 %vm347_vm13, %v1170_v21 }
 0xbb2   :  { %1870 = vmatpush.xpose.msk.msra.mxu3 %vm347_vm13, %v1168_v20  ;;  %v2065_v20 = vld [vmem:[%s2175_s25] sm:$0xff] }
 0xbb5   :  { %v1384_v24 = vpop.permute.xlu1 %1383  ;;  %1871 = vmatmul.msk.f32.vlgmr.msra.gmra.mxu3 %vm347_vm13, %v1164_v22 }
 0xbb6   :  { %1883 = vmatpush.xpose.msk.msrb.mxu3 %vm347_vm13, %v1384_v24 }
 0xbbd   :  { %v1166_v25 = vpop.permute.xlu1 %1165 }
 0xbbe   :  { %1872 = vmatmul.msk.f32.gmra.mxu3 %vm347_vm13, %v1166_v25 }
 0xbc5   :  { %v1382_v54 = vpop.permute.xlu1 %1381 }
 0xbc6   :  { %1884 = vmatpush.xpose.msk.msrb.mxu3 %vm347_vm13, %v1382_v54 }
 0xbc9   :  { %1885 = vmatmul.msk.f32.vlgmr.msrb.gmra.mxu3 %vm347_vm13, %v1378_v26 }
 0xbcd   :  { %v1273_v3 = vpop.permute.xlu1 %1272 }
 0xc22   :  { %v1097_v27 = vpop.f32.mrf.mxu0 }
 0xc23   :  { %v1098_v28 = vadd.f32 %v1097_v27, %v2414_v45 }
 0xc25   :  { %v1103_v29 = vsel %vm381_vm14, %v1098_v28, -inf }
 0xc26   :  { %1104 = vmax.xlane.f32.xlu0 %v1103_v29 }
 0xc2a   :  { %v1100_v59 = vpop.f32.mrf.mxu0 }
 0xc2b   :  { %v1101_v30 = vadd.f32 %v1100_v59, %v2417_v46 }
 0xc2d   :  { %v1106_v31 = vsel %vm385_vm15, %v1101_v30, -inf }
 0xc2e   :  { %1107 = vmax.xlane.f32.xlu0 %v1106_v31 }
 0xc38   :  { %v1196_v32 = vpop.f32.mrf.mxu3 }
 0xc39   :  { %v1197_v33 = vadd.f32 %v1196_v32, %v2414_v45 }
 0xc3b   :  { %v1202_v34 = vsel %vm381_vm14, %v1197_v33, -inf }
 0xc3c   :  { %1203 = vmax.xlane.f32.xlu2 %v1202_v34 }
 0xc41   :  { %v1199_v35 = vpop.f32.mrf.mxu3 }
 0xc42   :  { %v2641_v36 = vadd.f32 %v1199_v35, %v2417_v46  ;;  %1270 = vrot.lane.b32.xlu0 %v1062_v9, %s2134_s3  ;;  %s2082_s3 = scalar_lea.hbm %s2320_s6, 2 }
 0xc44   :  { %v1205_v37 = vsel %vm385_vm15, %v2641_v36, -inf }
 0xc45   :  { %1206 = vmax.xlane.f32.xlu1 %v1205_v37 }
 0xc4c   :  { %v1410_v39 = vpop.f32.mrf.mxu3 }
 0xc4d   :  { %v2647_v41 = vadd.f32 %v1410_v39, %v2414_v45 }
 0xc4f   :  { %v1416_v42 = vsel %vm381_vm14, %v2647_v41, -inf }
 0xc50   :  { %1417 = vmax.xlane.f32.xlu2 %v1416_v42 }
 0xc99   :  { %v1105_v43 = vpop.xlane.xlu0 %1104 }
 0xc9a   :  { %v1109_v44 = vsub.f32 %v1098_v28, %v1105_v43 }
 0xc9c   :  { %v1111_v47 = vmul.f32 1.442695, %v1109_v44 }
 0xc9e   :  { %2020 = vpow2.f32 %v1111_v47 }
 0xca1   :  { %v1108_v46 = vpop.xlane.xlu0 %1107 }
 0xca2   :  { %v1110_v49 = vsub.f32 %v1101_v30, %v1108_v46 }
 0xca4   :  { %v2021_v50 = vpop.eup %2020  ;;  %v1113_v51 = vmul.f32 1.442695, %v1110_v49 }
 0xca5   :  { %v1115_v52 = vsel %vm381_vm14, %v2021_v50, 0.0 }
 0xca6   :  { %2022 = vpow2.f32 %v1113_v51  ;;  %1116 = vadd.xlane.f32.xlu0 %v1115_v52 }
 0xcac   :  { %v2023_v53 = vpop.eup %2022 }
 0xcad   :  { %v1118_v45 = vsel %vm385_vm15, %v2023_v53, 0.0 }
 0xcae   :  { %1119 = vadd.xlane.f32.xlu0 %v1118_v45 }
 0xcaf   :  { %v1204_v55 = vpop.xlane.xlu2 %1203 }
 0xcb0   :  { %v1208_v56 = vsub.f32 %v1197_v33, %v1204_v55 }
 0xcb2   :  { %v1210_v58 = vmul.f32 1.442695, %v1208_v56 }
 0xcb4   :  { %2024 = vpow2.f32 %v1210_v58  ;;  %v1271_v38 = vpop.permute.xlu0 %1270 }
 0xcb8   :  { %v1207_v7 = vpop.xlane.xlu1 %1206 }
 0xcb9   :  { %v1209_v15 = vsub.f32 %v2641_v36, %v1207_v7 }
 0xcba   :  { %v2653_v60 = vpop.eup %2024 }
 0xcbb   :  { %v1214_v61 = vsel %vm381_vm14, %v2653_v60, 0.0  ;;  %v1212_v18 = vmul.f32 1.442695, %v1209_v15 }
 0xcbc   :  { %1215 = vadd.xlane.f32.xlu2 %v1214_v61 }
 0xcc2   :  { %1379 = vrot.lane.b32.xlu0 %v2611_v12, %s2131_s17  ;;  %v2064_v12 = vld [vmem:[%s2175_s25 + $0x8] sm:$0x3]  ;;  %s2822_s25 = sld [smem:[#allocation15_spill]]  ;;  %s1782_s17 = sshll.u32 %s2320_s6, 4  ;;  %s1783_s17 = int_to_ptr.hbm [resolvable:$true] %s1782_s17 }
 0xcc3   :  { %v1418_v54 = vpop.xlane.xlu2 %1417  ;;  %s2078_s21 = sshra.s32 %s1783_s17, 4  ;;  %s2079_s21 = int_to_ptr.hbm [resolvable:$true] %s2078_s21 }
 0xcc4   :  { %v1422_v26 = vsub.f32 %v2647_v41, %v1418_v54  ;;  %s2080_s29 = scalar_lea.hbm %s2079_s21, 2  ;;  %p2083_p1 = scmp.lt.s32.totalorder %s2079_s21, %s2320_s6 }
 0xcc5   :  { %p2081_p0 = scmp.ne.s32.totalorder %s2079_s21, %s2080_s29  ;;  %p2084_p2 = scmp.lt.s32.totalorder %s2082_s3, %s2080_s29 }
 0xcc6   :  { %v1424_v27 = vmul.f32 1.442695, %v1422_v26  ;;  %v1962_v26 = vld [vmem:[%s2823_s2] ss:$0 sm:$0xff] }
 0xcc7   :  { %p2085_p3 = por %p2084_p2, %p2083_p1 }
 0xcc8   :  { %v1489_v15 = vld [vmem:[%s2822_s25 + $0x18] sm:$0xff] }
 0xcc9   :  { %p2086_p4 = pnand %p2085_p3, %p2081_p0 }
 0xcd4   :  { %1224 = vrot.lane.b32.xlu2 %v2585_v8, %s2135_s8 }
 0xd19   :  { %v1117_v62 = vpop.xlane.xlu0 %1116 }
 0xd1a   :  { %2026 = vrcp.f32 %v1117_v62 }
 0xd20   :  { %v2027_v63 = vpop.eup %2026 }
 0xd21   :  { %v1123_v57 = vmul.f32 %v2027_v63, %v2021_v50  ;;  %v1120_v0 = vpop.xlane.xlu0 %1119 }
 0xd22   :  { %2028 = vrcp.f32 %v1120_v0 }
 0xd23   :  { %1867 = vmatmul.msk.f32.vlgmr.msrb.gmra.mxu1 %vm381_vm14, %v1123_v57  ;;  %2030 = vpow2.f32 %v1212_v18  ;;  %v1486_v18 = vld [vmem:[%s2822_s25] sm:$0xff] }
 0xd24   :  { %2032 = vpow2.f32 %v1424_v27  ;;  %1512 = vmatpush.msrb.mxu1 %v1489_v15 }
 0xd28   :  { %v2029_v40 = vpop.eup %2028 }
 0xd29   :  { %v1124_v1 = vmul.f32 %v2029_v40, %v2023_v53  ;;  %v2031_v24 = vpop.eup %2030 }
 0xd2a   :  { %v1217_v25 = vsel %vm385_vm15, %v2031_v24, 0.0  ;;  %v2680_v28 = vpop.eup %2032 }
 0xd2b   :  { %1868 = vmatmul.msk.f32.gmra.mxu1 %vm381_vm14, %v1124_v1  ;;  %v1428_v29 = vsel %vm381_vm14, %v2680_v28, 0.0 }
 0xd2f   :  { %v1216_v39 = vpop.xlane.xlu2 %1215 }
 0xd33   :  { %1878 = vmatmul.msk.f32.vlgmr.msra.gmra.mxu1 %vm347_vm13, %v1271_v38 }
 0xd34   :  { %v1380_v2 = vpop.permute.xlu0 %1379 }
 0xd35   :  { %1886 = vmatmul.msk.f32.gmra.mxu3 %vm347_vm13, %v1380_v2 }
 0xd37   :  { %v1225_v49 = vpop.permute.xlu2 %1224 }
 0xd3b   :  { %1879 = vmatmul.msk.f32.gmra.mxu1 %vm347_vm13, %v1273_v3 }
 0xda0   :  { %v1155_v4 = vpop.f32.mrf.mxu1 }
 0xda1   :  { %1161 = vst.msk [vmem:[#allocation3] sm:$0xff] %vm347_vm13, %v1155_v4  ;;  %vm2825_vm13 = vcmask 255168  }
 0xda8   :  { %v1158_v5 = vpop.f32.mrf.mxu1 }
 0xda9   :  { %1162 = vst.msk [vmem:[#allocation3 + $0x8] sm:$0x3] %vm443_vm1, %v1158_v5 }
 0xdb0   :  { %v1303_v6 = vpop.f32.mrf.mxu1 }
 0xdb1   :  { %v1304_v21 = vadd.f32 %v2065_v20, %v1303_v6 }
 0xdb3   :  { %v1309_v22 = vsel %vm381_vm14, %v1304_v21, -inf }
 0xdb8   :  { %v1306_v9 = vpop.f32.mrf.mxu1  ;;  %v1413_v10 = vpop.f32.mrf.mxu3 }
 0xdb9   :  { %v1307_v13 = vadd.f32 %v2064_v12, %v1306_v9  ;;  %v1414_v14 = vadd.f32 %v2064_v12, %v1413_v10 }
 0xdbb   :  { %v1312_v16 = vsel %vm385_vm15, %v1307_v13, -inf  ;;  %v1419_v17 = vsel %vm385_vm15, %v1414_v14, -inf }
 0xdbc   :  { %1313 = vmax.xlane.f32.xlu1 %v1312_v16  ;;  %1420 = vmax.xlane.f32.xlu0 %v1419_v17  ;;  %v1488_v16 = vld [vmem:[%s2822_s25 + $0x10] sm:$0xff]  ;;  %v1487_v17 = vld [vmem:[%s2822_s25 + $0x8] sm:$0xff] }
 0xdbd   :  { %1513 = vmatpush.msrb.mxu1 %v1488_v16 }
 0xdbf   :  { %1514 = vmatpush.msrb.mxu1 %v1487_v17  ;;  %v1647_v17 = vld [vmem:[%s2831_s0 + $0x58] sm:$0xff] }
 0xdc1   :  { %1515 = vmatpush.msrb.mxu1 %v1486_v18  ;;  %v1646_v18 = vld [vmem:[%s2831_s0 + $0x50] sm:$0xff] }
 0xdc4   :  { %1310 = vmax.xlane.f32.xlu0 %v1309_v22 }
 0xdcc   :  { %1218 = vadd.xlane.f32.xlu0 %v1217_v25 }
 0xdd5   :  { %1226 = vrot.lane.b32.xlu1 %v2593_v11, %s2135_s8 }
 0xde0   :  { %1333 = vrot.lane.b32.xlu0 %v2593_v11, %s2136_s14 }
 0xdff   :  { %1429 = vadd.xlane.f32.xlu1 %v1428_v29 }
 0xe18   :  { %1438 = vrot.lane.b32.xlu1 %v2585_v8, %s2137_s15 }
 0xe2f   :  { %v1314_v59 = vpop.xlane.xlu1 %1313  ;;  %v1421_v30 = vpop.xlane.xlu0 %1420 }
 0xe30   :  { %v1316_v31 = vsub.f32 %v1307_v13, %v1314_v59  ;;  %v1423_v53 = vsub.f32 %v1414_v14, %v1421_v30 }
 0xe32   :  { %v1319_v32 = vmul.f32 1.442695, %v1316_v31  ;;  %v1426_v45 = vmul.f32 1.442695, %v1423_v53 }
 0xe34   :  { %2034 = vpow2.f32 %v1319_v32 }
 0xe37   :  { %v1311_v33 = vpop.xlane.xlu0 %1310 }
 0xe38   :  { %v1315_v34 = vsub.f32 %v1304_v21, %v1311_v33 }
 0xe3a   :  { %v2035_v35 = vpop.eup %2034  ;;  %v1317_v36 = vmul.f32 1.442695, %v1315_v34 }
 0xe3b   :  { %v1324_v37 = vsel %vm385_vm15, %v2035_v35, 0.0 }
 0xe3c   :  { %2036 = vpow2.f32 %v1317_v36  ;;  %1325 = vadd.xlane.f32.xlu2 %v1324_v37 }
 0xe3d   :  { %2038 = vrcp.f32 %v1216_v39 }
 0xe3f   :  { %v1219_v43 = vpop.xlane.xlu0 %1218 }
 0xe40   :  { %2040 = vrcp.f32 %v1219_v43 }
 0xe41   :  { %2042 = vpow2.f32 %v1426_v45 }
 0xe42   :  { %v2037_v41 = vpop.eup %2036 }
 0xe43   :  { %v1321_v42 = vsel %vm381_vm14, %v2037_v41, 0.0  ;;  %v2039_v44 = vpop.eup %2038 }
 0xe44   :  { %1322 = vadd.xlane.f32.xlu0 %v1321_v42  ;;  %v1222_v46 = vmul.f32 %v2039_v44, %v2653_v60  ;;  %v1584_v44 = vld [vmem:[%s2826_s7 + $0x18] sm:$0xff] }
 0xe46   :  { %v2041_v50 = vpop.eup %2040 }
 0xe47   :  { %v1227_v47 = vpop.permute.xlu1 %1226  ;;  %v1223_v51 = vmul.f32 %v2041_v50, %v2031_v24  ;;  %v2043_v55 = vpop.eup %2042 }
 0xe48   :  { %1873 = vmatpush.msk.msra.mxu0 %vm416_vm0, %v1227_v47  ;;  %v1431_v56 = vsel %vm385_vm15, %v2043_v55, 0.0  ;;  %v1583_v47 = vld [vmem:[%s2826_s7 + $0x10] sm:$0xff] }
 0xe4a   :  { %1252 = vmatpush.msra.mxu0 %v1225_v49  ;;  %v1581_v49 = vld [vmem:[%s2826_s7] sm:$0xff] }
 0xe4b   :  { %1874 = vmatmul.msk.f32.vlgmr.msra.gmra.mxu0 %vm381_vm14, %v1222_v46  ;;  %v1582_v46 = vld [vmem:[%s2826_s7 + $0x8] sm:$0xff] }
 0xe52   :  { %v1334_v52 = vpop.permute.xlu0 %1333 }
 0xe53   :  { %1875 = vmatmul.msk.f32.gmra.mxu0 %vm381_vm14, %v1223_v51  ;;  %1880 = vmatpush.msk.msrb.mxu2 %vm416_vm0, %v1334_v52 }
 0xe58   :  { %1331 = vrot.lane.b32.xlu0 %v2585_v8, %s2136_s14 }
 0xe60   :  { %1440 = vrot.lane.b32.xlu0 %v2593_v11, %s2137_s15 }
 0xe72   :  { %v1430_v38 = vpop.xlane.xlu1 %1429 }
 0xe8a   :  { %1432 = vadd.xlane.f32.xlu0 %v1431_v56  ;;  %v1439_v3 = vpop.permute.xlu1 %1438 }
 0xeaf   :  { %v1326_v60 = vpop.xlane.xlu2 %1325 }
 0xeb7   :  { %v1323_v58 = vpop.xlane.xlu0 %1322 }
 0xeb8   :  { %2044 = vrcp.f32 %v1323_v58 }
 0xeb9   :  { %2046 = vrcp.f32 %v1326_v60 }
 0xeba   :  { %2048 = vrcp.f32 %v1430_v38 }
 0xebe   :  { %v2045_v61 = vpop.eup %2044 }
 0xebf   :  { %v1329_v8 = vmul.f32 %v2045_v61, %v2037_v41  ;;  %v2047_v11 = vpop.eup %2046  ;;  %v1963_v61 = vld [vmem:[%s2829_s10] ss:$0 sm:$0xff] }
 0xec0   :  { %v2049_v0 = vpop.eup %2048  ;;  %v1330_v1 = vmul.f32 %v2047_v11, %v2035_v35  ;;  %v1651_v11 = vld [vmem:[%s2831_s0 + $0x78] sm:$0xff] }
 0xec1   :  { %v1436_v2 = vmul.f32 %v2049_v0, %v2680_v28  ;;  %1656 = vmatpush.msra.mxu3 %v1651_v11 }
 0xec8   :  { %v1254_v62 = vpop.f32.mrf.mxu0 }
 0xec9   :  { %1262 = vrot.lane.b32.xlu2 %v1254_v62, %s2138_s16 }
 0xeca   :  { %v1332_v63 = vpop.permute.xlu0 %1331 }
 0xecb   :  { %1359 = vmatpush.msrb.mxu2 %v1332_v63 }
 0xecc   :  { %1881 = vmatmul.msk.f32.vlgmr.msrb.gmra.mxu2 %vm381_vm14, %v1329_v8  ;;  %v1964_v8 = vld [vmem:[%s2830_s11] ss:$0 sm:$0xff] }
 0xecd   :  { %1607 = vmatpush.msra.mxu2 %v1584_v44 }
 0xecf   :  { %1608 = vmatpush.msra.mxu2 %v1583_v47 }
 0xed0   :  { %v1257_v57 = vpop.f32.mrf.mxu0 }
 0xed1   :  { %1264 = vrot.lane.b32.xlu0 %v1257_v57, %s2138_s16  ;;  %1609 = vmatpush.msra.mxu2 %v1582_v46  ;;  %v1650_v57 = vld [vmem:[%s2831_s0 + $0x70] sm:$0xff] }
 0xed2   :  { %v1441_v40 = vpop.permute.xlu0 %1440  ;;  %1657 = vmatpush.msra.mxu3 %v1650_v57 }
 0xed3   :  { %1887 = vmatpush.msk.msrb.mxu0 %vm416_vm0, %v1441_v40  ;;  %1610 = vmatpush.msra.mxu2 %v1581_v49  ;;  %v1649_v40 = vld [vmem:[%s2831_s0 + $0x68] sm:$0xff] }
 0xed4   :  { %1882 = vmatmul.msk.f32.gmra.mxu2 %vm381_vm14, %v1330_v1  ;;  %1658 = vmatpush.msra.mxu3 %v1649_v40 }
 0xed5   :  { %1466 = vmatpush.msrb.mxu0 %v1439_v3  ;;  %v1648_v3 = vld [vmem:[%s2831_s0 + $0x60] sm:$0xff] }
 0xed6   :  { %1888 = vmatmul.msk.f32.vlgmr.msrb.gmra.mxu0 %vm381_vm14, %v1436_v2  ;;  %1659 = vmatpush.msra.mxu3 %v1648_v3 }
 0xed8   :  { %1660 = vmatpush.msra.mxu3 %v1647_v17 }
 0xeda   :  { %1661 = vmatpush.msra.mxu3 %v1646_v18 }
 0xefd   :  { %v1433_v4 = vpop.xlane.xlu0 %1432 }
 0xefe   :  { %2050 = vrcp.f32 %v1433_v4 }
 0xf04   :  { %v2051_v5 = vpop.eup %2050 }
 0xf05   :  { %v1437_v6 = vmul.f32 %v2051_v5, %v2043_v55 }
 0xf07   :  { %1889 = vmatmul.msk.f32.gmra.mxu0 %vm381_vm14, %v1437_v6  ;;  %vm2827_vm14 = vcmask 254976  }
 0xf08   :  { %vm2828_vm15 = vmmov %vm2827_vm14 }
 0xf23   :  { %v1263_v7 = vpop.permute.xlu2 %1262 }
 0xf24   :  { %1268 = vst.msk [vmem:[#allocation3] sm:$0xff] %vm550_vm2, %v1263_v7 }
 0xf43   :  { %v1265_v9 = vpop.permute.xlu0 %1264 }
 0xf44   :  { %1269 = vst.msk [vmem:[#allocation3 + $0x8] sm:$0x3] %vm552_vm3, %v1265_v9 }
 0xf4f   :  { %v1361_v10 = vpop.f32.mrf.mxu2 }
 0xf50   :  { %1369 = vrot.lane.b32.xlu1 %v1361_v10, %s2140_s22 }
 0xf53   :  { %v1468_v12 = vpop.f32.mrf.mxu0 }
 0xf54   :  { %1476 = vrot.lane.b32.xlu2 %v1468_v12, %s2139_s18 }
 0xf57   :  { %v1364_v13 = vpop.f32.mrf.mxu2 }
 0xf58   :  { %1371 = vrot.lane.b32.xlu1 %v1364_v13, %s2140_s22 }
 0xf84   :  { %v1471_v14 = vpop.f32.mrf.mxu0 }
 0xf85   :  { %1478 = vrot.lane.b32.xlu2 %v1471_v14, %s2139_s18 }
 0xfae   :  { %v1477_v21 = vpop.permute.xlu2 %1476 }
 0xfc2   :  { %v1370_v20 = vpop.permute.xlu1 %1369 }
 0xfc3   :  { %1375 = vst.msk [vmem:[#allocation3] sm:$0xff] %vm659_vm7, %v1370_v20  ;;  %v1645_v20 = vld [vmem:[%s2831_s0 + $0x48] sm:$0xff] }
 0xfc4   :  { %1482 = vst.msk [vmem:[#allocation3] sm:$0xff] %vm768_vm8, %v1477_v21  ;;  %1662 = vmatpush.msra.mxu3 %v1645_v20  ;;  %v1644_v21 = vld [vmem:[%s2831_s0 + $0x40] sm:$0xff]  ;;  %vm2834_vm8 = vmmov %vm2827_vm14 }
 0xfc5   :  { %vm2835_vm9 = vmmov %vm2834_vm8 }
 0xfc6   :  { %1663 = vmatpush.msra.mxu3 %v1644_v21 }
 0xfca   :  { %v1372_v22 = vpop.permute.xlu1 %1371 }
 0xfcb   :  { %1376 = vst.msk [vmem:[#allocation3 + $0x8] sm:$0x3] %vm2824_vm5, %v1372_v22  ;;  %v1484_v24 = vld [vmem:[#allocation3] sm:$0xff]  ;;  %v1643_v22 = vld [vmem:[%s2831_s0 + $0x38] sm:$0xff] }
 0xfcc   :  { %1890 = vmatmul.msk.f32.vlgmr.msrb.gmra.mxu1 %vm239_vm4, %v1484_v24  ;;  %v1642_v24 = vld [vmem:[%s2831_s0 + $0x30] sm:$0xff]  ;;  %1664 = vmatpush.msra.mxu3 %v1643_v22  ;;  %v1967_v22 = vld [vmem:[%s2836_s13] ss:$0 sm:$0xff] }
 0xfce   :  { %1665 = vmatpush.msra.mxu3 %v1642_v24 }
 0xfdf   :  { %v1479_v25 = vpop.permute.xlu2 %1478 }
 0xfe0   :  { %1483 = vst.msk [vmem:[#allocation3 + $0x8] sm:$0x3] %vm2825_vm13, %v1479_v25  ;;  %v1641_v25 = vld [vmem:[%s2831_s0 + $0x28] sm:$0xff] }
 0xfe1   :  { %1666 = vmatpush.msra.mxu3 %v1641_v25 }
 0xfe7   :  { %v1485_v54 = vld [vmem:[#allocation3 + $0x8] sm:$0x3] }
 0xfe8   :  { %1891 = vmatmul.msk.f32.gmra.mxu1 %vm239_vm4, %v1485_v54  ;;  %v1640_v54 = vld [vmem:[%s2831_s0 + $0x20] sm:$0xff] }
 0xfe9   :  { %1667 = vmatpush.msra.mxu3 %v1640_v54  ;;  %v1968_v54 = vld [vmem:[%s2305_s20] ss:$0 sm:$0xff] }
0x1049   :  { %v1517_v27 = vpop.f32.mrf.mxu1 }
0x104a   :  { %v1518_v28 = vadd.f32 %v1962_v26, %v1517_v27  ;;  %v1638_v27 = vld [vmem:[%s2831_s0 + $0x10] sm:$0xff] }
0x104c   :  { %v2724_v29 = vadd.f32 %v1518_v28, %v2559_v19  ;;  %v1637_v28 = vld [vmem:[%s2831_s0 + $0x8] sm:$0xff] }
0x104e   :  { %v1527_v59 = vsel %vm239_vm4, %v2724_v29, 0.0 }
0x104f   :  { %1528 = vadd.xlane.f32.xlu1 %v1527_v59  ;;  %v1636_v59 = vld [vmem:[%s2831_s0] sm:$0xff] }
0x1065   :  { %v1520_v30 = vpop.f32.mrf.mxu1 }
0x1066   :  { %v1521_v31 = vadd.f32 %v1962_v26, %v1520_v30  ;;  %v1639_v26 = vld [vmem:[%s2831_s0 + $0x18] sm:$0xff]  ;;  %v1965_v30 = vld [vmem:[%s2832_s5] ss:$0 sm:$0xff] }
0x1067   :  { %1668 = vmatpush.msra.mxu3 %v1639_v26 }
0x1068   :  { %v2729_v32 = vadd.f32 %v1521_v31, %v2564_v23 }
0x1069   :  { %1669 = vmatpush.msra.mxu3 %v1638_v27 }
0x106a   :  { %v1530_v33 = vsel %vm2827_vm14, %v2729_v32, 0.0 }
0x106b   :  { %1531 = vadd.xlane.f32.xlu2 %v1530_v33  ;;  %1670 = vmatpush.msra.mxu3 %v1637_v28 }
0x106d   :  { %1671 = vmatpush.msra.mxu3 %v1636_v59 }
0x10c2   :  { %v1529_v34 = vpop.xlane.xlu1 %1528 }
0x10c3   :  { %v1533_v19 = vmul.f32 %v1529_v34, %v2360_v48 }
0x10c5   :  { %v1535_v35 = vsub.f32 %v2724_v29, %v1533_v19 }
0x10c7   :  { %v1537_v36 = vmul.f32 %v1535_v35, %v1535_v35 }
0x10c9   :  { %v1539_v37 = vsel %vm239_vm4, %v1537_v36, 0.0 }
0x10ca   :  { %1540 = vadd.xlane.f32.xlu0 %v1539_v37 }
0x10de   :  { %v1532_v39 = vpop.xlane.xlu2 %1531 }
0x10df   :  { %v1534_v23 = vmul.f32 %v1532_v39, %v2360_v48 }
0x10e1   :  { %v1536_v41 = vsub.f32 %v2729_v32, %v1534_v23 }
0x10e3   :  { %v1538_v42 = vmul.f32 %v1536_v41, %v1536_v41 }
0x10e5   :  { %v1542_v43 = vsel %vm2828_vm15, %v1538_v42, 0.0 }
0x10e6   :  { %1543 = vadd.xlane.f32.xlu2 %v1542_v43 }
0x113d   :  { %v1541_v50 = vpop.xlane.xlu0 %1540 }
0x113e   :  { %v1545_v51 = vmul.f32 %v1541_v50, %v2360_v48 }
0x1140   :  { %v1547_v52 = vadd.f32 1e-06, %v1545_v51 }
0x1142   :  { %2052 = vrsqrt.f32 %v1547_v52  ;;  %vm1555_vm1 = vweird.f32 %v1547_v52 }
0x1148   :  { %v2053_v53 = vpop.eup %2052 }
0x1149   :  { %v1550_v45 = vmul.f32 %v2053_v53, %v1547_v52  ;;  %vm1556_vm0 = vweird.f32 %v2053_v53 }
0x114a   :  { %vm1557_vm2 = vmor %vm1555_vm1, %vm1556_vm0 }
0x114b   :  { %v1551_v55 = vmul.f32 %v2053_v53, %v1550_v45 }
0x114d   :  { %v1552_v56 = vmul.f32 0.5, %v1551_v55 }
0x114f   :  { %v1553_v58 = vsub.f32 1.5, %v1552_v56  ;;  %v1966_v56 = vld [vmem:[%s2833_s9] ss:$0 sm:$0xff] }
0x1151   :  { %v1554_v60 = vmul.f32 %v2053_v53, %v1553_v58 }
0x1153   :  { %v1558_v38 = vsel %vm1557_vm2, %v2053_v53, %v1554_v60 }
0x1154   :  { %v1569_v62 = vmul.f32 %v1558_v38, %v1535_v35 }
0x1156   :  { %v1574_v63 = vmul.f32 %v1963_v61, %v1569_v62 }
0x1158   :  { %v1579_v0 = vadd.f32 %v1964_v8, %v1574_v63 }
0x1159   :  { %v1544_v1 = vpop.xlane.xlu2 %1543 }
0x115a   :  { %v1546_v2 = vmul.f32 %v1544_v1, %v2360_v48  ;;  %1892 = vmatmul.msk.f32.vlgmr.msra.gmra.mxu2 %vm239_vm4, %v1579_v0 }
0x115c   :  { %v1548_v4 = vadd.f32 1e-06, %v1546_v2 }
0x115e   :  { %2054 = vrsqrt.f32 %v1548_v4  ;;  %vm1565_vm6 = vweird.f32 %v1548_v4 }
0x1164   :  { %v2055_v5 = vpop.eup %2054 }
0x1165   :  { %v1560_v6 = vmul.f32 %v2055_v5, %v1548_v4  ;;  %vm1566_vm3 = vweird.f32 %v2055_v5 }
0x1166   :  { %vm1567_vm7 = vmor %vm1565_vm6, %vm1566_vm3 }
0x1167   :  { %v1561_v7 = vmul.f32 %v2055_v5, %v1560_v6  ;;  %v1740_v6 = vld [vmem:[%s2310_s30 + $0x18] sm:$0xff] }
0x1168   :  { %1763 = vmatpush.msra.mxu0 %v1740_v6 }
0x1169   :  { %v1562_v9 = vmul.f32 0.5, %v1561_v7  ;;  %v1739_v7 = vld [vmem:[%s2310_s30 + $0x10] sm:$0xff] }
0x116a   :  { %1764 = vmatpush.msra.mxu0 %v1739_v7 }
0x116b   :  { %v1563_v10 = vsub.f32 1.5, %v1562_v9  ;;  %v1738_v9 = vld [vmem:[%s2310_s30 + $0x8] sm:$0xff] }
0x116c   :  { %1765 = vmatpush.msra.mxu0 %v1738_v9 }
0x116d   :  { %v1564_v12 = vmul.f32 %v2055_v5, %v1563_v10  ;;  %v1737_v10 = vld [vmem:[%s2310_s30] sm:$0xff]  ;;  %s2141_s30 = smov [#allocation4]  }
0x116e   :  { %1766 = vmatpush.msra.mxu0 %v1737_v10  ;;  %s1780_s20 = sshll.u32 %s2141_s30, 4  ;;  %s1781_s20 = int_to_ptr.vmem [resolvable:$true] %s1780_s20 }
0x116f   :  { %v1568_v13 = vsel %vm1567_vm7, %v2055_v5, %v1564_v12 }
0x1170   :  { %v1570_v14 = vmul.f32 %v1568_v13, %v1536_v41 }
0x1172   :  { %v1575_v15 = vmul.f32 %v1963_v61, %v1570_v14 }
0x1174   :  { %v1580_v16 = vadd.f32 %v1964_v8, %v1575_v15 }
0x1176   :  { %1893 = vmatmul.msk.f32.gmra.mxu2 %vm239_vm4, %v1580_v16 }
0x11dd   :  { %v1612_v31 = vpop.f32.mrf.mxu2 }
0x11de   :  { %v1613_v33 = vadd.f32 %v1965_v30, %v1612_v31 }
0x11e0   :  { %v1620_v34 = vmul.f32 0.044715, %v1613_v33  ;;  %v1618_v23 = vmul.f32 0.5, %v1613_v33 }
0x11e2   :  { %v1622_v19 = vmul.f32 %v1620_v34, %v1613_v33 }
0x11e4   :  { %v1624_v35 = vmul.f32 %v1622_v19, %v1613_v33 }
0x11e6   :  { %v1626_v36 = vadd.f32 %v1624_v35, %v1613_v33 }
0x11e8   :  { %v1628_v37 = vmul.f32 0.7978846, %v1626_v36 }
0x11ea   :  { %2056 = vtanh.f32 %v1628_v37 }
0x11f0   :  { %v2057_v39 = vpop.eup %2056 }
0x11f1   :  { %v1632_v41 = vadd.f32 1.0, %v2057_v39 }
0x11f3   :  { %v1634_v42 = vmul.f32 %v1632_v41, %v1618_v23 }
0x11f5   :  { %1672 = vmatmul.f32.vlgmr.msra.gmra.mxu3 %v1634_v42 }
0x11f9   :  { %v1615_v43 = vpop.f32.mrf.mxu2 }
0x11fa   :  { %v1616_v44 = vadd.f32 %v1965_v30, %v1615_v43 }
0x11fc   :  { %v1621_v47 = vmul.f32 0.044715, %v1616_v44  ;;  %v1619_v53 = vmul.f32 0.5, %v1616_v44 }
0x11fe   :  { %v1623_v46 = vmul.f32 %v1621_v47, %v1616_v44 }
0x1200   :  { %v1625_v49 = vmul.f32 %v1623_v46, %v1616_v44 }
0x1202   :  { %v1627_v50 = vadd.f32 %v1625_v49, %v1616_v44 }
0x1204   :  { %v1629_v51 = vmul.f32 0.7978846, %v1627_v50 }
0x1206   :  { %2058 = vtanh.f32 %v1629_v51 }
0x120c   :  { %v2059_v52 = vpop.eup %2058 }
0x120d   :  { %v1633_v45 = vadd.f32 1.0, %v2059_v52 }
0x120f   :  { %v1635_v55 = vmul.f32 %v1633_v45, %v1619_v53 }
0x1211   :  { %1675 = vmatmul.f32.gmra.mxu3 %v1635_v55 }
0x1278   :  { %v1673_v58 = vpop.f32.mrf.mxu3 }
0x1279   :  { %v1674_v60 = vadd.f32 %v1966_v56, %v1673_v58 }
0x127b   :  { %v1679_v61 = vadd.f32 %v1674_v60, %v2724_v29 }
0x127d   :  { %v1683_v38 = vsel %vm239_vm4, %v1679_v61, 0.0 }
0x127e   :  { %1684 = vadd.xlane.f32.xlu1 %v1683_v38 }
0x1294   :  { %v1676_v62 = vpop.f32.mrf.mxu3 }
0x1295   :  { %v1677_v8 = vadd.f32 %v1966_v56, %v1676_v62 }
0x1297   :  { %v1680_v63 = vadd.f32 %v1677_v8, %v2729_v32 }
0x1299   :  { %v1686_v11 = vsel %vm2834_vm8, %v1680_v63, 0.0 }
0x129a   :  { %1687 = vadd.xlane.f32.xlu0 %v1686_v11 }
0x12f1   :  { %v1685_v57 = vpop.xlane.xlu1 %1684 }
0x12f2   :  { %v1689_v0 = vmul.f32 %v1685_v57, %v2360_v48 }
0x12f4   :  { %v1691_v40 = vsub.f32 %v1679_v61, %v1689_v0 }
0x12f6   :  { %v1693_v1 = vmul.f32 %v1691_v40, %v1691_v40 }
0x12f8   :  { %v1695_v29 = vsel %vm239_vm4, %v1693_v1, 0.0 }
0x12f9   :  { %1696 = vadd.xlane.f32.xlu2 %v1695_v29 }
0x130d   :  { %v1688_v2 = vpop.xlane.xlu0 %1687 }
0x130e   :  { %v1690_v3 = vmul.f32 %v1688_v2, %v2360_v48 }
0x1310   :  { %v1692_v4 = vsub.f32 %v1680_v63, %v1690_v3 }
0x1312   :  { %v1694_v5 = vmul.f32 %v1692_v4, %v1692_v4 }
0x1314   :  { %v1698_v32 = vsel %vm2835_vm9, %v1694_v5, 0.0 }
0x1315   :  { %1699 = vadd.xlane.f32.xlu1 %v1698_v32 }
0x136c   :  { %v1697_v12 = vpop.xlane.xlu2 %1696 }
0x136d   :  { %v1701_v13 = vmul.f32 %v1697_v12, %v2360_v48 }
0x136f   :  { %v1703_v14 = vadd.f32 1e-06, %v1701_v13 }
0x1371   :  { %2060 = vrsqrt.f32 %v1703_v14  ;;  %vm1711_vm10 = vweird.f32 %v1703_v14 }
0x1377   :  { %v2061_v15 = vpop.eup %2060 }
0x1378   :  { %v1706_v16 = vmul.f32 %v2061_v15, %v1703_v14  ;;  %vm1712_vm12 = vweird.f32 %v2061_v15 }
0x1379   :  { %vm1713_vm11 = vmor %vm1711_vm10, %vm1712_vm12 }
0x137a   :  { %v1707_v17 = vmul.f32 %v2061_v15, %v1706_v16 }
0x137c   :  { %v1708_v18 = vmul.f32 0.5, %v1707_v17 }
0x137e   :  { %v1709_v20 = vsub.f32 1.5, %v1708_v18 }
0x1380   :  { %v1710_v21 = vmul.f32 %v2061_v15, %v1709_v20 }
0x1382   :  { %v1714_v24 = vsel %vm1713_vm11, %v2061_v15, %v1710_v21 }
0x1383   :  { %v1725_v25 = vmul.f32 %v1714_v24, %v1691_v40 }
0x1385   :  { %v1730_v26 = vmul.f32 %v1967_v22, %v1725_v25 }
0x1387   :  { %v1735_v27 = vadd.f32 %v1968_v54, %v1730_v26 }
0x1388   :  { %v1700_v28 = vpop.xlane.xlu1 %1699 }
0x1389   :  { %v1702_v59 = vmul.f32 %v1700_v28, %v2360_v48  ;;  %1894 = vmatmul.msk.f32.vlgmr.msra.gmra.mxu0 %vm239_vm4, %v1735_v27  ;;  %v1969_v48 = vld [vmem:[%s2315_s4] ss:$0 sm:$0xff] }
0x138b   :  { %v1704_v30 = vadd.f32 1e-06, %v1702_v59 }
0x138d   :  { %2062 = vrsqrt.f32 %v1704_v30  ;;  %vm1721_vm13 = vweird.f32 %v1704_v30 }
0x1393   :  { %v2063_v31 = vpop.eup %2062 }
0x1394   :  { %v1716_v33 = vmul.f32 %v2063_v31, %v1704_v30  ;;  %vm1722_vm5 = vweird.f32 %v2063_v31 }
0x1395   :  { %vm1723_vm14 = vmor %vm1721_vm13, %vm1722_vm5 }
0x1396   :  { %v1717_v34 = vmul.f32 %v2063_v31, %v1716_v33 }
0x1398   :  { %v1718_v19 = vmul.f32 0.5, %v1717_v34 }
0x139a   :  { %v1719_v35 = vsub.f32 1.5, %v1718_v19 }
0x139c   :  { %v1720_v36 = vmul.f32 %v2063_v31, %v1719_v35 }
0x139e   :  { %v1724_v37 = vsel %vm1723_vm14, %v2063_v31, %v1720_v36 }
0x139f   :  { %v1726_v39 = vmul.f32 %v1724_v37, %v1692_v4 }
0x13a1   :  { %v1731_v23 = vmul.f32 %v1967_v22, %v1726_v39 }
0x13a3   :  { %v1736_v41 = vadd.f32 %v1968_v54, %v1731_v23 }
0x13a5   :  { %1895 = vmatmul.msk.f32.gmra.mxu0 %vm239_vm4, %v1736_v41 }
0x1406   :  { %v1768_v42 = vpop.f32.mrf.mxu0 }
0x1407   :  { %v1769_v43 = vadd.f32 %v1969_v48, %v1768_v42 }
0x1409   :  { %1773 = vst [vmem:[#allocation4] sm:$0x1] %v1769_v43 }
0x140a   :  { %1774 = vst [vmem:[#allocation4 - $0x4] sm:$0x20] %v1769_v43 }
0x140b   :  { %2089 = shalt.err (!%p2086_p4)
}
0x140c   :  { %1785 = dma.vmem_to_hbm [thread:$0]  %s1781_s20, 32, %s1783_s17, [#allocation5]  }
0x1422   :  { %v1771_v44 = vpop.f32.mrf.mxu0 }
0x1423   :  { %2090 = dma.done.wait [#allocation5], 32  }
0x1424   :  { %2091 = vsyncadd [#allocation5], 4294967264 }
0x1425   :  { %1790 = vsyncpa [#allocation5], 1 }

</bundles_post_ra>
